<compile_context>
chip_gen: v6e
topology: v6e:2x2x1
jax: 0.10.0
libtpu: 0.0.40
codegen_flags: <defaults>
</compile_context>

<pallas_src>
import functools
import math

import jax
import jax.numpy as jnp
from jax.experimental import pallas as pl
from jax.experimental.pallas import tpu as pltpu

_EPS = 1e-5
_LANE = 128

# Tile sizes (fit comfortably in scoped VMEM on v5e/v6e/v7x with double
# buffering; TN=128 also matches v5e's 128-wide MXU).
_TM, _TN, _TK = 256, 128, 128


def _round_up(x, m):
    return (x + m - 1) // m * m


# ----------------------------- Pallas kernel -------------------------------

def _mm_kernel(x_ref, w_ref, b_ref, *rest, relu, has_res):
    """Tiled matmul with f32 accumulator; epilogue = +bias (+res) (+ReLU)."""
    if has_res:
        r_ref, o_ref, acc_ref = rest
    else:
        o_ref, acc_ref = rest
    k = pl.program_id(2)

    @pl.when(k == 0)
    def _():
        acc_ref[...] = jnp.zeros_like(acc_ref)

    acc_ref[...] += jnp.dot(x_ref[...], w_ref[...],
                            preferred_element_type=jnp.float32)

    @pl.when(k == pl.num_programs(2) - 1)
    def _():
        y = acc_ref[...] + b_ref[...]
        if has_res:
            y = y + r_ref[...]
        if relu:
            y = jnp.maximum(y, 0.0)
        o_ref[...] = y.astype(o_ref.dtype)


def fused_matmul(x, w, bias, residual=None, relu=True,
                 out_dtype=jnp.float32, tm=_TM, tn=_TN, tk=_TK):
    """(M,K)@(K,N) + bias [+ residual] [+ ReLU], tiled & pipelined on TPU."""
    m, k = x.shape
    n = w.shape[1]
    tm = tm if m >= tm else _round_up(m, 8)
    mp, kp, np_ = _round_up(m, tm), _round_up(k, tk), _round_up(n, tn)

    # bf16 MXU inputs, zero-padded to tile multiples (zeros contribute nothing).
    xb = jnp.pad(x, ((0, mp - m), (0, kp - k))).astype(jnp.bfloat16)
    wb = jnp.pad(w, ((0, kp - k), (0, np_ - n))).astype(jnp.bfloat16)
    bb = jnp.pad(bias, (0, np_ - n)).reshape(1, np_).astype(jnp.float32)

    grid = (mp // tm, np_ // tn, kp // tk)
    in_specs = [
        pl.BlockSpec((tm, tk), lambda i, j, kk: (i, kk)),   # patches stream
        pl.BlockSpec((tk, tn), lambda i, j, kk: (kk, j)),   # weights (M-invariant)
        pl.BlockSpec((1, tn), lambda i, j, kk: (0, j)),     # bias
    ]
    args = [xb, wb, bb]
    has_res = residual is not None
    if has_res:
        rb = jnp.pad(residual, ((0, mp - m), (0, np_ - n))).astype(jnp.float32)
        in_specs.append(pl.BlockSpec((tm, tn), lambda i, j, kk: (i, j)))
        args.append(rb)

    flops = 2 * mp * kp * np_
    bytes_accessed = (mp * kp + kp * np_) * 2 + mp * np_ * jnp.dtype(out_dtype).itemsize
    if has_res:
        bytes_accessed += mp * np_ * 4

    out = pl.pallas_call(
        functools.partial(_mm_kernel, relu=relu, has_res=has_res),
        out_shape=jax.ShapeDtypeStruct((mp, np_), out_dtype),
        grid=grid,
        in_specs=in_specs,
        out_specs=pl.BlockSpec((tm, tn), lambda i, j, kk: (i, j)),
        scratch_shapes=[pltpu.VMEM((tm, tn), jnp.float32)],
        compiler_params=pltpu.CompilerParams(
            dimension_semantics=("parallel", "parallel", "arbitrary")),
        cost_estimate=pl.CostEstimate(flops=int(flops), transcendentals=0,
                                      bytes_accessed=int(bytes_accessed)),
    )(*args)
    return out[:m, :n]


# ----------------------------- conv wrappers --------------------------------

def conv1x1_bn(x, w, bias, stride=1, relu=True, residual=None,
               out_dtype=jnp.float32):
    """1x1 conv (+folded BN) on NHWC with lane-padded channels."""
    n, h, wd, c = x.shape
    xs = x[:, ::stride, ::stride, :] if stride != 1 else x
    _, ho, wo, _ = xs.shape
    m = n * ho * wo
    res2 = None if residual is None else residual.reshape(m, -1)
    out = fused_matmul(xs.reshape(m, c), w, bias, residual=res2, relu=relu,
                       out_dtype=out_dtype)
    return out.reshape(n, ho, wo, -1)


def conv3x3_bn(x, w, bias, stride=1, relu=True, residual=None,
               out_dtype=jnp.float32):
    """3x3 conv (pad=1) via bf16 im2col, streamed in (TM,TK) tiles."""
    # TODO(synk): accumulate the 9 taps inside the kernel via shifted index_maps
    # over the padded input to avoid materializing the 9x im2col tensor in HBM.
    n, h, wd, c = x.shape
    xb = x.astype(jnp.bfloat16)
    xp = jnp.pad(xb, ((0, 0), (1, 1), (1, 1), (0, 0)))
    ho = (h + 2 - 3) // stride + 1
    wo = (wd + 2 - 3) // stride + 1
    taps = []
    for i in range(3):
        for j in range(3):
            taps.append(jax.lax.slice(
                xp, (0, i, j, 0),
                (n, i + (ho - 1) * stride + 1, j + (wo - 1) * stride + 1, c),
                (1, stride, stride, 1)))
    m = n * ho * wo
    patches = jnp.stack(taps, axis=3).reshape(m, 9 * c)
    wm = w.reshape(9 * c, -1)
    res2 = None if residual is None else residual.reshape(m, -1)
    out = fused_matmul(patches, wm, bias, residual=res2, relu=relu,
                       out_dtype=out_dtype)
    return out.reshape(n, ho, wo, -1)


# ----------------------------- parameters -----------------------------------

def _fold_bn(w, gamma, beta, mean, var):
    """Fold eval-mode BN affine into conv weight/bias (last axis = Cout)."""
    scale = gamma / jnp.sqrt(var + _EPS)
    shift = beta - mean * scale
    return w * scale, shift


def init_bottleneck_params(key, inplanes, planes, stride=1):
    """Build Bottleneck params with BN folded and channels padded to 128."""
    exp = 4
    keys = jax.random.split(key, 4)

    def conv_w(k, kh, cin, cout):
        n = kh * kh * cout
        return jax.random.normal(k, (kh, kh, cin, cout), jnp.float32) * math.sqrt(2.0 / n)

    def bn(c):  # eval-mode running stats (PyTorch defaults)
        return (jnp.ones((c,), jnp.float32), jnp.zeros((c,), jnp.float32),
                jnp.zeros((c,), jnp.float32), jnp.ones((c,), jnp.float32))

    cin_p = _round_up(inplanes, _LANE)
    pl_p = _round_up(planes, _LANE)
    out_p = _round_up(planes * exp, _LANE)

    def pad1x1(w, cin_pad, cout_pad):
        cin, cout = w.shape[2], w.shape[3]
        return jnp.pad(w.reshape(cin, cout),
                       ((0, cin_pad - cin), (0, cout_pad - cout)))

    def pad3x3(w, cin_pad, cout_pad):
        cin, cout = w.shape[2], w.shape[3]
        return jnp.pad(w, ((0, 0), (0, 0), (0, cin_pad - cin), (0, cout_pad - cout)))

    def padb(b, cout_pad):
        return jnp.pad(b, (0, cout_pad - b.shape[0]))

    p = {'inplanes': inplanes, 'planes': planes, 'stride': stride}

    w1, b1 = _fold_bn(conv_w(keys[0], 1, inplanes, planes), *bn(planes))
    w2, b2 = _fold_bn(conv_w(keys[1], 3, planes, planes), *bn(planes))
    w3, b3 = _fold_bn(conv_w(keys[2], 1, planes, planes * exp), *bn(planes * exp))
    p['w1'], p['b1'] = pad1x1(w1, cin_p, pl_p), padb(b1, pl_p)
    p['w2'], p['b2'] = pad3x3(w2, pl_p, pl_p), padb(b2, pl_p)
    p['w3'], p['b3'] = pad1x1(w3, pl_p, out_p), padb(b3, out_p)

    if stride != 1 or inplanes != planes * exp:
        wd, bd = _fold_bn(conv_w(keys[3], 1, inplanes, planes * exp),
                          *bn(planes * exp))
        p['down_w'], p['down_b'] = pad1x1(wd, cin_p, out_p), padb(bd, out_p)
    return p


# ----------------------------- forward pass ---------------------------------

def bottleneck_forward(params, x_nchw):
    inplanes = params['inplanes']
    planes = params['planes']
    stride = params['stride']
    cin_p = _round_up(inplanes, _LANE)

    # NCHW -> NHWC, lane-pad channels with zeros.
    x = jnp.transpose(x_nchw, (0, 2, 3, 1)).astype(jnp.float32)
    x = jnp.pad(x, ((0, 0), (0, 0), (0, 0), (0, cin_p - inplanes)))

    if 'down_w' in params:
        residual = conv1x1_bn(x, params['down_w'], params['down_b'],
                              stride=stride, relu=False, out_dtype=jnp.float32)
    else:
        residual = x  # identity skip (inplanes == planes*4, stride == 1)

    # conv1 (1x1) -> bn1 -> relu         (bf16 intermediate activations)
    out = conv1x1_bn(x, params['w1'], params['b1'], stride=1, relu=True,
                     out_dtype=jnp.bfloat16)
    # conv2 (3x3, stride) -> bn2 -> relu
    out = conv3x3_bn(out, params['w2'], params['b2'], stride=stride, relu=True,
                     out_dtype=jnp.bfloat16)
    # conv3 (1x1) -> bn3 -> += residual -> relu   (fused in kernel epilogue, f32)
    out = conv1x1_bn(out, params['w3'], params['b3'], stride=1, relu=True,
                     residual=residual, out_dtype=jnp.float32)

    out = out[..., :planes * 4]                 # drop lane padding
    return jnp.transpose(out, (0, 3, 1, 2))     # NHWC -> NCHW


# ----------------------------- main ------------------------------------------

if __name__ == "__main__":
    key = jax.random.PRNGKey(0)
    k_params, k_x = jax.random.split(key)

    inplanes, planes, stride = 64, 32, 2   # downsample path exercised
    params = init_bottleneck_params(k_params, inplanes, planes, stride)

    x = jax.random.normal(k_x, (2, inplanes, 16, 16), jnp.float32)  # NCHW

    fwd = jax.jit(lambda xx: bottleneck_forward(params, xx))
    out = jax.block_until_ready(fwd(x))

    assert out.shape == (2, planes * 4, 8, 8), out.shape
    assert bool(jnp.all(jnp.isfinite(out)))
    print("KERNEL_OK")
</pallas_src>

<mosaic_0001>
module attributes {stable_mosaic.version = 11 : i64} {
  func.func @_mm_kernel(%arg0: i32, %arg1: i32, %arg2: i32, %arg3: memref<128x128xbf16, #tpu.memory_space<vmem>>, %arg4: memref<128x128xbf16, #tpu.memory_space<vmem>>, %arg5: memref<1x128xf32, #tpu.memory_space<vmem>>, %arg6: memref<128x128xf32, #tpu.memory_space<vmem>>, %arg7: memref<128x128xf32, #tpu.memory_space<vmem>>) attributes {dimension_semantics = [#tpu.dimension_semantics<parallel>, #tpu.dimension_semantics<parallel>, #tpu.dimension_semantics<arbitrary>], iteration_bounds = array<i64: 1, 1, 1>, scalar_prefetch = 0 : i64, scratch_operands = 1 : i64, tpu.core_type = #tpu.core_type<tc>, window_params = [{transform_indices = @transform_0, window_bounds = array<i64: 128, 128>}, {transform_indices = @transform_1, window_bounds = array<i64: 128, 128>}, {transform_indices = @transform_2, window_bounds = array<i64: 1, 128>}, {transform_indices = @transform_3, window_bounds = array<i64: 128, 128>}]} {
    %c0_i32 = arith.constant 0 : i32
    %0 = arith.cmpi eq, %arg2, %c0_i32 : i32
    %1 = arith.extui %0 : i1 to i32
    %c0_i32_0 = arith.constant 0 : i32
    %2 = arith.cmpi ne, %1, %c0_i32_0 : i32
    scf.if %2 {
      %cst_10 = arith.constant 0.000000e+00 : f32
      %12 = vector.broadcast %cst_10 : f32 to vector<128x128xf32>
      %c0_11 = arith.constant 0 : index
      %c0_12 = arith.constant 0 : index
      %13 = vector.load %arg7[%c0_11, %c0_12] : memref<128x128xf32, #tpu.memory_space<vmem>>, vector<128x128xf32>
      tpu.vector_store %arg7[%c0_11, %c0_12], %12 {strides = array<i32>} : memref<128x128xf32, #tpu.memory_space<vmem>>, vector<128x128xf32>,
    } else {
    }
    %c0 = arith.constant 0 : index
    %c0_1 = arith.constant 0 : index
    %3 = vector.load %arg7[%c0, %c0_1] : memref<128x128xf32, #tpu.memory_space<vmem>>, vector<128x128xf32>
    %c0_2 = arith.constant 0 : index
    %c0_3 = arith.constant 0 : index
    %4 = vector.load %arg3[%c0_2, %c0_3] : memref<128x128xbf16, #tpu.memory_space<vmem>>, vector<128x128xbf16>
    %c0_4 = arith.constant 0 : index
    %c0_5 = arith.constant 0 : index
    %5 = vector.load %arg4[%c0_4, %c0_5] : memref<128x128xbf16, #tpu.memory_space<vmem>>, vector<128x128xbf16>
    %cst = arith.constant dense<0.000000e+00> : vector<128x128xf32>
    %6 = tpu.matmul %4, %5, %cst {dimension_numbers = #tpu.dot_dimension_numbers<[1], [0], [0], [1], [0, 0, 1, 1], [], []>} : vector<128x128xbf16>, vector<128x128xbf16>, vector<128x128xf32> -> vector<128x128xf32>
    %7 = arith.addf %3, %6 : vector<128x128xf32>
    %c0_6 = arith.constant 0 : index
    %c0_7 = arith.constant 0 : index
    %8 = vector.load %arg7[%c0_6, %c0_7] : memref<128x128xf32, #tpu.memory_space<vmem>>, vector<128x128xf32>
    tpu.vector_store %arg7[%c0_6, %c0_7], %7 {strides = array<i32>} : memref<128x128xf32, #tpu.memory_space<vmem>>, vector<128x128xf32>,
    %c0_i32_8 = arith.constant 0 : i32
    %9 = arith.cmpi eq, %arg2, %c0_i32_8 : i32
    %10 = arith.extui %9 : i1 to i32
    %c0_i32_9 = arith.constant 0 : i32
    %11 = arith.cmpi ne, %10, %c0_i32_9 : i32
    scf.if %11 {
      %c0_10 = arith.constant 0 : index
      %c0_11 = arith.constant 0 : index
      %12 = vector.load %arg7[%c0_10, %c0_11] : memref<128x128xf32, #tpu.memory_space<vmem>>, vector<128x128xf32>
      %c0_12 = arith.constant 0 : index
      %c0_13 = arith.constant 0 : index
      %13 = vector.load %arg5[%c0_12, %c0_13] : memref<1x128xf32, #tpu.memory_space<vmem>>, vector<1x128xf32>
      %14 = vector.broadcast %13 : vector<1x128xf32> to vector<128x128xf32>
      %15 = arith.addf %12, %14 : vector<128x128xf32>
      %c0_14 = arith.constant 0 : index
      %c0_15 = arith.constant 0 : index
      %16 = vector.load %arg6[%c0_14, %c0_15] : memref<128x128xf32, #tpu.memory_space<vmem>>, vector<128x128xf32>
      tpu.vector_store %arg6[%c0_14, %c0_15], %15 {strides = array<i32>} : memref<128x128xf32, #tpu.memory_space<vmem>>, vector<128x128xf32>,
    } else {
    }
    return
  }
  func.func @transform_0(%arg0: i32, %arg1: i32, %arg2: i32) -> (i32, i32) {
    %c0_i32 = arith.constant 0 : i32
    return %arg0, %arg2 : i32, i32
  }
  func.func @transform_1(%arg0: i32, %arg1: i32, %arg2: i32) -> (i32, i32) {
    %c0_i32 = arith.constant 0 : i32
    return %arg2, %arg1 : i32, i32
  }
  func.func @transform_2(%arg0: i32, %arg1: i32, %arg2: i32) -> (i32, i32) {
    %c0_i32 = arith.constant 0 : i32
    %c0_i32_0 = arith.constant 0 : i32
    return %c0_i32, %arg1 : i32, i32
  }
  func.func @transform_3(%arg0: i32, %arg1: i32, %arg2: i32) -> (i32, i32) {
    %c0_i32 = arith.constant 0 : i32
    return %arg0, %arg1 : i32, i32
  }
}

module attributes {stable_mosaic.version = 11 : i64} {
  func.func @_mm_kernel(%arg0: i32, %arg1: i32, %arg2: i32, %arg3: memref<256x128xbf16, #tpu.memory_space<vmem>>, %arg4: memref<128x128xbf16, #tpu.memory_space<vmem>>, %arg5: memref<1x128xf32, #tpu.memory_space<vmem>>, %arg6: memref<256x128xbf16, #tpu.memory_space<vmem>>, %arg7: memref<256x128xf32, #tpu.memory_space<vmem>>) attributes {dimension_semantics = [#tpu.dimension_semantics<parallel>, #tpu.dimension_semantics<parallel>, #tpu.dimension_semantics<arbitrary>], iteration_bounds = array<i64: 2, 1, 1>, scalar_prefetch = 0 : i64, scratch_operands = 1 : i64, tpu.core_type = #tpu.core_type<tc>, window_params = [{transform_indices = @transform_0, window_bounds = array<i64: 256, 128>}, {transform_indices = @transform_1, window_bounds = array<i64: 128, 128>}, {transform_indices = @transform_2, window_bounds = array<i64: 1, 128>}, {transform_indices = @transform_3, window_bounds = array<i64: 256, 128>}]} {
    %c0_i32 = arith.constant 0 : i32
    %0 = arith.cmpi eq, %arg2, %c0_i32 : i32
    %1 = arith.extui %0 : i1 to i32
    %c0_i32_0 = arith.constant 0 : i32
    %2 = arith.cmpi ne, %1, %c0_i32_0 : i32
    scf.if %2 {
      %cst_10 = arith.constant 0.000000e+00 : f32
      %12 = vector.broadcast %cst_10 : f32 to vector<256x128xf32>
      %c0_11 = arith.constant 0 : index
      %c0_12 = arith.constant 0 : index
      %13 = vector.load %arg7[%c0_11, %c0_12] : memref<256x128xf32, #tpu.memory_space<vmem>>, vector<256x128xf32>
      tpu.vector_store %arg7[%c0_11, %c0_12], %12 {strides = array<i32>} : memref<256x128xf32, #tpu.memory_space<vmem>>, vector<256x128xf32>,
    } else {
    }
    %c0 = arith.constant 0 : index
    %c0_1 = arith.constant 0 : index
    %3 = vector.load %arg7[%c0, %c0_1] : memref<256x128xf32, #tpu.memory_space<vmem>>, vector<256x128xf32>
    %c0_2 = arith.constant 0 : index
    %c0_3 = arith.constant 0 : index
    %4 = vector.load %arg3[%c0_2, %c0_3] : memref<256x128xbf16, #tpu.memory_space<vmem>>, vector<256x128xbf16>
    %c0_4 = arith.constant 0 : index
    %c0_5 = arith.constant 0 : index
    %5 = vector.load %arg4[%c0_4, %c0_5] : memref<128x128xbf16, #tpu.memory_space<vmem>>, vector<128x128xbf16>
    %cst = arith.constant dense<0.000000e+00> : vector<256x128xf32>
    %6 = tpu.matmul %4, %5, %cst {dimension_numbers = #tpu.dot_dimension_numbers<[1], [0], [0], [1], [0, 0, 1, 1], [], []>} : vector<256x128xbf16>, vector<128x128xbf16>, vector<256x128xf32> -> vector<256x128xf32>
    %7 = arith.addf %3, %6 : vector<256x128xf32>
    %c0_6 = arith.constant 0 : index
    %c0_7 = arith.constant 0 : index
    %8 = vector.load %arg7[%c0_6, %c0_7] : memref<256x128xf32, #tpu.memory_space<vmem>>, vector<256x128xf32>
    tpu.vector_store %arg7[%c0_6, %c0_7], %7 {strides = array<i32>} : memref<256x128xf32, #tpu.memory_space<vmem>>, vector<256x128xf32>,
    %c0_i32_8 = arith.constant 0 : i32
    %9 = arith.cmpi eq, %arg2, %c0_i32_8 : i32
    %10 = arith.extui %9 : i1 to i32
    %c0_i32_9 = arith.constant 0 : i32
    %11 = arith.cmpi ne, %10, %c0_i32_9 : i32
    scf.if %11 {
      %c0_10 = arith.constant 0 : index
      %c0_11 = arith.constant 0 : index
      %12 = vector.load %arg7[%c0_10, %c0_11] : memref<256x128xf32, #tpu.memory_space<vmem>>, vector<256x128xf32>
      %c0_12 = arith.constant 0 : index
      %c0_13 = arith.constant 0 : index
      %13 = vector.load %arg5[%c0_12, %c0_13] : memref<1x128xf32, #tpu.memory_space<vmem>>, vector<1x128xf32>
      %14 = vector.broadcast %13 : vector<1x128xf32> to vector<256x128xf32>
      %15 = arith.addf %12, %14 : vector<256x128xf32>
      %cst_14 = arith.constant 0.000000e+00 : f32
      %16 = vector.broadcast %cst_14 : f32 to vector<256x128xf32>
      %17 = arith.maximumf %15, %16 : vector<256x128xf32>
      %18 = arith.truncf %17 : vector<256x128xf32> to vector<256x128xbf16>
      %c0_15 = arith.constant 0 : index
      %c0_16 = arith.constant 0 : index
      %19 = vector.load %arg6[%c0_15, %c0_16] : memref<256x128xbf16, #tpu.memory_space<vmem>>, vector<256x128xbf16>
      tpu.vector_store %arg6[%c0_15, %c0_16], %18 {strides = array<i32>} : memref<256x128xbf16, #tpu.memory_space<vmem>>, vector<256x128xbf16>,
    } else {
    }
    return
  }
  func.func @transform_0(%arg0: i32, %arg1: i32, %arg2: i32) -> (i32, i32) {
    %c0_i32 = arith.constant 0 : i32
    return %arg0, %arg2 : i32, i32
  }
  func.func @transform_1(%arg0: i32, %arg1: i32, %arg2: i32) -> (i32, i32) {
    %c0_i32 = arith.constant 0 : i32
    return %arg2, %arg1 : i32, i32
  }
  func.func @transform_2(%arg0: i32, %arg1: i32, %arg2: i32) -> (i32, i32) {
    %c0_i32 = arith.constant 0 : i32
    %c0_i32_0 = arith.constant 0 : i32
    return %c0_i32, %arg1 : i32, i32
  }
  func.func @transform_3(%arg0: i32, %arg1: i32, %arg2: i32) -> (i32, i32) {
    %c0_i32 = arith.constant 0 : i32
    return %arg0, %arg1 : i32, i32
  }
}

module attributes {stable_mosaic.version = 11 : i64} {
  func.func @_mm_kernel(%arg0: i32, %arg1: i32, %arg2: i32, %arg3: memref<128x128xbf16, #tpu.memory_space<vmem>>, %arg4: memref<128x128xbf16, #tpu.memory_space<vmem>>, %arg5: memref<1x128xf32, #tpu.memory_space<vmem>>, %arg6: memref<128x128xbf16, #tpu.memory_space<vmem>>, %arg7: memref<128x128xf32, #tpu.memory_space<vmem>>) attributes {dimension_semantics = [#tpu.dimension_semantics<parallel>, #tpu.dimension_semantics<parallel>, #tpu.dimension_semantics<arbitrary>], iteration_bounds = array<i64: 1, 1, 9>, scalar_prefetch = 0 : i64, scratch_operands = 1 : i64, tpu.core_type = #tpu.core_type<tc>, window_params = [{transform_indices = @transform_0, window_bounds = array<i64: 128, 128>}, {transform_indices = @transform_1, window_bounds = array<i64: 128, 128>}, {transform_indices = @transform_2, window_bounds = array<i64: 1, 128>}, {transform_indices = @transform_3, window_bounds = array<i64: 128, 128>}]} {
    %c0_i32 = arith.constant 0 : i32
    %0 = arith.cmpi eq, %arg2, %c0_i32 : i32
    %1 = arith.extui %0 : i1 to i32
    %c0_i32_0 = arith.constant 0 : i32
    %2 = arith.cmpi ne, %1, %c0_i32_0 : i32
    scf.if %2 {
      %cst_9 = arith.constant 0.000000e+00 : f32
      %12 = vector.broadcast %cst_9 : f32 to vector<128x128xf32>
      %c0_10 = arith.constant 0 : index
      %c0_11 = arith.constant 0 : index
      %13 = vector.load %arg7[%c0_10, %c0_11] : memref<128x128xf32, #tpu.memory_space<vmem>>, vector<128x128xf32>
      tpu.vector_store %arg7[%c0_10, %c0_11], %12 {strides = array<i32>} : memref<128x128xf32, #tpu.memory_space<vmem>>, vector<128x128xf32>,
    } else {
    }
    %c0 = arith.constant 0 : index
    %c0_1 = arith.constant 0 : index
    %3 = vector.load %arg7[%c0, %c0_1] : memref<128x128xf32, #tpu.memory_space<vmem>>, vector<128x128xf32>
    %c0_2 = arith.constant 0 : index
    %c0_3 = arith.constant 0 : index
    %4 = vector.load %arg3[%c0_2, %c0_3] : memref<128x128xbf16, #tpu.memory_space<vmem>>, vector<128x128xbf16>
    %c0_4 = arith.constant 0 : index
    %c0_5 = arith.constant 0 : index
    %5 = vector.load %arg4[%c0_4, %c0_5] : memref<128x128xbf16, #tpu.memory_space<vmem>>, vector<128x128xbf16>
    %cst = arith.constant dense<0.000000e+00> : vector<128x128xf32>
    %6 = tpu.matmul %4, %5, %cst {dimension_numbers = #tpu.dot_dimension_numbers<[1], [0], [0], [1], [0, 0, 1, 1], [], []>} : vector<128x128xbf16>, vector<128x128xbf16>, vector<128x128xf32> -> vector<128x128xf32>
    %7 = arith.addf %3, %6 : vector<128x128xf32>
    %c0_6 = arith.constant 0 : index
    %c0_7 = arith.constant 0 : index
    %8 = vector.load %arg7[%c0_6, %c0_7] : memref<128x128xf32, #tpu.memory_space<vmem>>, vector<128x128xf32>
    tpu.vector_store %arg7[%c0_6, %c0_7], %7 {strides = array<i32>} : memref<128x128xf32, #tpu.memory_space<vmem>>, vector<128x128xf32>,
    %c8_i32 = arith.constant 8 : i32
    %9 = arith.cmpi eq, %arg2, %c8_i32 : i32
    %10 = arith.extui %9 : i1 to i32
    %c0_i32_8 = arith.constant 0 : i32
    %11 = arith.cmpi ne, %10, %c0_i32_8 : i32
    scf.if %11 {
      %c0_9 = arith.constant 0 : index
      %c0_10 = arith.constant 0 : index
      %12 = vector.load %arg7[%c0_9, %c0_10] : memref<128x128xf32, #tpu.memory_space<vmem>>, vector<128x128xf32>
      %c0_11 = arith.constant 0 : index
      %c0_12 = arith.constant 0 : index
      %13 = vector.load %arg5[%c0_11, %c0_12] : memref<1x128xf32, #tpu.memory_space<vmem>>, vector<1x128xf32>
      %14 = vector.broadcast %13 : vector<1x128xf32> to vector<128x128xf32>
      %15 = arith.addf %12, %14 : vector<128x128xf32>
      %cst_13 = arith.constant 0.000000e+00 : f32
      %16 = vector.broadcast %cst_13 : f32 to vector<128x128xf32>
      %17 = arith.maximumf %15, %16 : vector<128x128xf32>
      %18 = arith.truncf %17 : vector<128x128xf32> to vector<128x128xbf16>
      %c0_14 = arith.constant 0 : index
      %c0_15 = arith.constant 0 : index
      %19 = vector.load %arg6[%c0_14, %c0_15] : memref<128x128xbf16, #tpu.memory_space<vmem>>, vector<128x128xbf16>
      tpu.vector_store %arg6[%c0_14, %c0_15], %18 {strides = array<i32>} : memref<128x128xbf16, #tpu.memory_space<vmem>>, vector<128x128xbf16>,
    } else {
    }
    return
  }
  func.func @transform_0(%arg0: i32, %arg1: i32, %arg2: i32) -> (i32, i32) {
    %c0_i32 = arith.constant 0 : i32
    return %arg0, %arg2 : i32, i32
  }
  func.func @transform_1(%arg0: i32, %arg1: i32, %arg2: i32) -> (i32, i32) {
    %c0_i32 = arith.constant 0 : i32
    return %arg2, %arg1 : i32, i32
  }
  func.func @transform_2(%arg0: i32, %arg1: i32, %arg2: i32) -> (i32, i32) {
    %c0_i32 = arith.constant 0 : i32
    %c0_i32_0 = arith.constant 0 : i32
    return %c0_i32, %arg1 : i32, i32
  }
  func.func @transform_3(%arg0: i32, %arg1: i32, %arg2: i32) -> (i32, i32) {
    %c0_i32 = arith.constant 0 : i32
    return %arg0, %arg1 : i32, i32
  }
}

module attributes {stable_mosaic.version = 11 : i64} {
  func.func @_mm_kernel(%arg0: i32, %arg1: i32, %arg2: i32, %arg3: memref<128x128xbf16, #tpu.memory_space<vmem>>, %arg4: memref<128x128xbf16, #tpu.memory_space<vmem>>, %arg5: memref<1x128xf32, #tpu.memory_space<vmem>>, %arg6: memref<128x128xf32, #tpu.memory_space<vmem>>, %arg7: memref<128x128xf32, #tpu.memory_space<vmem>>, %arg8: memref<128x128xf32, #tpu.memory_space<vmem>>) attributes {dimension_semantics = [#tpu.dimension_semantics<parallel>, #tpu.dimension_semantics<parallel>, #tpu.dimension_semantics<arbitrary>], iteration_bounds = array<i64: 1, 1, 1>, scalar_prefetch = 0 : i64, scratch_operands = 1 : i64, tpu.core_type = #tpu.core_type<tc>, window_params = [{transform_indices = @transform_0, window_bounds = array<i64: 128, 128>}, {transform_indices = @transform_1, window_bounds = array<i64: 128, 128>}, {transform_indices = @transform_2, window_bounds = array<i64: 1, 128>}, {transform_indices = @transform_3, window_bounds = array<i64: 128, 128>}, {transform_indices = @transform_4, window_bounds = array<i64: 128, 128>}]} {
    %c0_i32 = arith.constant 0 : i32
    %0 = arith.cmpi eq, %arg2, %c0_i32 : i32
    %1 = arith.extui %0 : i1 to i32
    %c0_i32_0 = arith.constant 0 : i32
    %2 = arith.cmpi ne, %1, %c0_i32_0 : i32
    scf.if %2 {
      %cst_10 = arith.constant 0.000000e+00 : f32
      %12 = vector.broadcast %cst_10 : f32 to vector<128x128xf32>
      %c0_11 = arith.constant 0 : index
      %c0_12 = arith.constant 0 : index
      %13 = vector.load %arg8[%c0_11, %c0_12] : memref<128x128xf32, #tpu.memory_space<vmem>>, vector<128x128xf32>
      tpu.vector_store %arg8[%c0_11, %c0_12], %12 {strides = array<i32>} : memref<128x128xf32, #tpu.memory_space<vmem>>, vector<128x128xf32>,
    } else {
    }
    %c0 = arith.constant 0 : index
    %c0_1 = arith.constant 0 : index
    %3 = vector.load %arg8[%c0, %c0_1] : memref<128x128xf32, #tpu.memory_space<vmem>>, vector<128x128xf32>
    %c0_2 = arith.constant 0 : index
    %c0_3 = arith.constant 0 : index
    %4 = vector.load %arg3[%c0_2, %c0_3] : memref<128x128xbf16, #tpu.memory_space<vmem>>, vector<128x128xbf16>
    %c0_4 = arith.constant 0 : index
    %c0_5 = arith.constant 0 : index
    %5 = vector.load %arg4[%c0_4, %c0_5] : memref<128x128xbf16, #tpu.memory_space<vmem>>, vector<128x128xbf16>
    %cst = arith.constant dense<0.000000e+00> : vector<128x128xf32>
    %6 = tpu.matmul %4, %5, %cst {dimension_numbers = #tpu.dot_dimension_numbers<[1], [0], [0], [1], [0, 0, 1, 1], [], []>} : vector<128x128xbf16>, vector<128x128xbf16>, vector<128x128xf32> -> vector<128x128xf32>
    %7 = arith.addf %3, %6 : vector<128x128xf32>
    %c0_6 = arith.constant 0 : index
    %c0_7 = arith.constant 0 : index
    %8 = vector.load %arg8[%c0_6, %c0_7] : memref<128x128xf32, #tpu.memory_space<vmem>>, vector<128x128xf32>
    tpu.vector_store %arg8[%c0_6, %c0_7], %7 {strides = array<i32>} : memref<128x128xf32, #tpu.memory_space<vmem>>, vector<128x128xf32>,
    %c0_i32_8 = arith.constant 0 : i32
    %9 = arith.cmpi eq, %arg2, %c0_i32_8 : i32
    %10 = arith.extui %9 : i1 to i32
    %c0_i32_9 = arith.constant 0 : i32
    %11 = arith.cmpi ne, %10, %c0_i32_9 : i32
    scf.if %11 {
      %c0_10 = arith.constant 0 : index
      %c0_11 = arith.constant 0 : index
      %12 = vector.load %arg8[%c0_10, %c0_11] : memref<128x128xf32, #tpu.memory_space<vmem>>, vector<128x128xf32>
      %c0_12 = arith.constant 0 : index
      %c0_13 = arith.constant 0 : index
      %13 = vector.load %arg5[%c0_12, %c0_13] : memref<1x128xf32, #tpu.memory_space<vmem>>, vector<1x128xf32>
      %14 = vector.broadcast %13 : vector<1x128xf32> to vector<128x128xf32>
      %15 = arith.addf %12, %14 : vector<128x128xf32>
      %c0_14 = arith.constant 0 : index
      %c0_15 = arith.constant 0 : index
      %16 = vector.load %arg6[%c0_14, %c0_15] : memref<128x128xf32, #tpu.memory_space<vmem>>, vector<128x128xf32>
      %17 = arith.addf %15, %16 : vector<128x128xf32>
      %cst_16 = arith.constant 0.000000e+00 : f32
      %18 = vector.broadcast %cst_16 : f32 to vector<128x128xf32>
      %19 = arith.maximumf %17, %18 : vector<128x128xf32>
      %c0_17 = arith.constant 0 : index
      %c0_18 = arith.constant 0 : index
      %20 = vector.load %arg7[%c0_17, %c0_18] : memref<128x128xf32, #tpu.memory_space<vmem>>, vector<128x128xf32>
      tpu.vector_store %arg7[%c0_17, %c0_18], %19 {strides = array<i32>} : memref<128x128xf32, #tpu.memory_space<vmem>>, vector<128x128xf32>,
    } else {
    }
    return
  }
  func.func @transform_0(%arg0: i32, %arg1: i32, %arg2: i32) -> (i32, i32) {
    %c0_i32 = arith.constant 0 : i32
    return %arg0, %arg2 : i32, i32
  }
  func.func @transform_1(%arg0: i32, %arg1: i32, %arg2: i32) -> (i32, i32) {
    %c0_i32 = arith.constant 0 : i32
    return %arg2, %arg1 : i32, i32
  }
  func.func @transform_2(%arg0: i32, %arg1: i32, %arg2: i32) -> (i32, i32) {
    %c0_i32 = arith.constant 0 : i32
    %c0_i32_0 = arith.constant 0 : i32
    return %c0_i32, %arg1 : i32, i32
  }
  func.func @transform_3(%arg0: i32, %arg1: i32, %arg2: i32) -> (i32, i32) {
    %c0_i32 = arith.constant 0 : i32
    return %arg0, %arg1 : i32, i32
  }
  func.func @transform_4(%arg0: i32, %arg1: i32, %arg2: i32) -> (i32, i32) {
    %c0_i32 = arith.constant 0 : i32
    return %arg0, %arg1 : i32, i32
  }
}

</mosaic_0001>

<bundles_post_ra>
// kernel: _lambda_.4
= control target key start
LH: loop header
LB: loop body
LE: loop exit
PB: predicated region body
PF: predicated region fallthrough
CT: control target
= control target key end

     0   :  { %s586_s1 = inlined_call_operand.vmem [shape: bf16[128,128], index: 1, kind: input, shape index: {}]   ;;  %s587_s0 = inlined_call_operand.vmem [shape: bf16[128,128], index: 0, kind: input, shape index: {}]   ;;  %s588_s2 = inlined_call_operand.vmem [shape: f32[1,128], index: 2, kind: input, shape index: {}]   ;;  %s589_s3 = inlined_call_operand.vmem [shape: f32[128,128], index: 3, kind: output, shape index: {}]  }
   0x1   :  { %v451_v0 = vld [vmem:[%s586_s1 + $0x38] sm:$0xff]   ;;  %v452_v1 = vld [vmem:[%s586_s1 + $0x30] sm:$0xff]   ;;  %v453_v2 = vld [vmem:[%s586_s1 + $0x28] sm:$0xff]  }
   0x2   :  { %403 = vmatprep.subr.bf16.mxu0 %v451_v0  ;;  %435 = vmatprep.subr.bf16.mxu1 %v451_v0  ;;  %v454_v3 = vld [vmem:[%s586_s1 + $0x20] sm:$0xff]   ;;  %v455_v6 = vld [vmem:[%s586_s1 + $0x18] sm:$0xff]   ;;  %v456_v7 = vld [vmem:[%s586_s1 + $0x10] sm:$0xff]  }
   0x3   :  { %404 = vmatpush3.bf16.msra.mxu0 %v451_v0  ;;  %443 = vmatpush3.bf16.msra.mxu1 %v451_v0  ;;  %v459_v4 = vld [vmem:[%s587_s0] sm:$0xff]   ;;  %v457_v8 = vld [vmem:[%s586_s1 + $0x8] sm:$0xff]   ;;  %v463_v12 = vld [vmem:[%s587_s0 + $0x10] sm:$0xff]  }
   0x4   :  { %405 = vmatprep.subr.bf16.mxu0 %v452_v1  ;;  %436 = vmatprep.subr.bf16.mxu1 %v452_v1  ;;  %v460_v5 = vld [vmem:[%s587_s0 + $0x20] sm:$0xff]   ;;  %v461_v10 = vld [vmem:[%s587_s0 + $0x8] sm:$0xff]   ;;  %v464_v13 = vld [vmem:[%s587_s0 + $0x30] sm:$0xff]  }
   0x5   :  { %419 = vmatprep.mubr.bf16.mxu0 %v459_v4  ;;  %427 = vmatprep.mubr.bf16.mxu1 %v460_v5  ;;  %v458_v9 = vld [vmem:[%s586_s1] sm:$0xff]   ;;  %v462_v11 = vld [vmem:[%s587_s0 + $0x28] sm:$0xff]   ;;  %v465_v14 = vld [vmem:[%s587_s0 + $0x18] sm:$0xff]  }
   0x6   :  { %v466_v15 = vld [vmem:[%s587_s0 + $0x38] sm:$0xff]   ;;  %v386_v16 = vld [vmem:[%s588_s2] ss:$0 sm:$0xff] }
   0x7   :  { %406 = vmatpush3.bf16.msra.mxu0 %v452_v1  ;;  %444 = vmatpush3.bf16.msra.mxu1 %v452_v1 }
   0x8   :  { %407 = vmatprep.subr.bf16.mxu0 %v453_v2  ;;  %437 = vmatprep.subr.bf16.mxu1 %v453_v2 }
   0xb   :  { %408 = vmatpush3.bf16.msra.mxu0 %v453_v2  ;;  %445 = vmatpush3.bf16.msra.mxu1 %v453_v2 }
   0xc   :  { %409 = vmatprep.subr.bf16.mxu0 %v454_v3  ;;  %438 = vmatprep.subr.bf16.mxu1 %v454_v3 }
   0xf   :  { %410 = vmatpush3.bf16.msra.mxu0 %v454_v3  ;;  %446 = vmatpush3.bf16.msra.mxu1 %v454_v3 }
  0x10   :  { %411 = vmatprep.subr.bf16.mxu0 %v455_v6  ;;  %439 = vmatprep.subr.bf16.mxu1 %v455_v6 }
  0x13   :  { %412 = vmatpush3.bf16.msra.mxu0 %v455_v6  ;;  %447 = vmatpush3.bf16.msra.mxu1 %v455_v6 }
  0x14   :  { %413 = vmatprep.subr.bf16.mxu0 %v456_v7  ;;  %440 = vmatprep.subr.bf16.mxu1 %v456_v7 }
  0x17   :  { %414 = vmatpush3.bf16.msra.mxu0 %v456_v7  ;;  %448 = vmatpush3.bf16.msra.mxu1 %v456_v7 }
  0x18   :  { %415 = vmatprep.subr.bf16.mxu0 %v457_v8  ;;  %441 = vmatprep.subr.bf16.mxu1 %v457_v8 }
  0x1b   :  { %416 = vmatpush3.bf16.msra.mxu0 %v457_v8  ;;  %449 = vmatpush3.bf16.msra.mxu1 %v457_v8 }
  0x1c   :  { %417 = vmatprep.subr.bf16.mxu0 %v458_v9  ;;  %442 = vmatprep.subr.bf16.mxu1 %v458_v9 }
  0x1f   :  { %418 = vmatpush3.bf16.msra.mxu0 %v458_v9  ;;  %450 = vmatpush3.bf16.msra.mxu1 %v458_v9 }
  0x22   :  { %420 = vmatmul.mubr.bf16.vlgmr.msra.gmra.mxu0 %v461_v10  ;;  %428 = vmatmul.mubr.bf16.vlgmr.msra.gmra.mxu1 %v462_v11 }
  0x23   :  { %423 = vmatprep.mubr.bf16.mxu0 %v463_v12  ;;  %431 = vmatprep.mubr.bf16.mxu1 %v464_v13 }
  0x2a   :  { %424 = vmatmul.mubr.bf16.gmra.mxu0 %v465_v14  ;;  %432 = vmatmul.mubr.bf16.gmra.mxu1 %v466_v15 }
  0xe2   :  { %v421_v17 = vpop.f32.mrf.mxu0  ;;  %v429_v18 = vpop.f32.mrf.mxu1 }
  0xe3   :  { %v336_v19 = vadd.f32 %v421_v17, %v386_v16  ;;  %v344_v20 = vadd.f32 %v429_v18, %v386_v16 }
  0xe4   :  { %v213_v21 = vpop.f32.mrf.mxu0  ;;  %v245_v22 = vpop.f32.mrf.mxu1 }
  0xe5   :  { %352 = vst [vmem:[%s589_s3 + $0x10] sm:$0xff] %v336_v19  ;;  %360 = vst [vmem:[%s589_s3 + $0x50] sm:$0xff] %v344_v20  ;;  %v334_v23 = vadd.f32 %v386_v16, %v213_v21  ;;  %v342_v24 = vadd.f32 %v386_v16, %v245_v22 }
  0xe6   :  { %v422_v25 = vpop.f32.mrf.mxu0  ;;  %v430_v26 = vpop.f32.mrf.mxu1 }
  0xe7   :  { %350 = vst [vmem:[%s589_s3] sm:$0xff] %v334_v23  ;;  %358 = vst [vmem:[%s589_s3 + $0x40] sm:$0xff] %v342_v24  ;;  %v337_v27 = vadd.f32 %v422_v25, %v386_v16  ;;  %v345_v28 = vadd.f32 %v430_v26, %v386_v16 }
  0xe8   :  { %v216_v29 = vpop.f32.mrf.mxu0  ;;  %v248_v30 = vpop.f32.mrf.mxu1 }
  0xe9   :  { %353 = vst [vmem:[%s589_s3 + $0x18] sm:$0xff] %v337_v27  ;;  %361 = vst [vmem:[%s589_s3 + $0x58] sm:$0xff] %v345_v28  ;;  %v335_v31 = vadd.f32 %v386_v16, %v216_v29  ;;  %v343_v32 = vadd.f32 %v386_v16, %v248_v30 }
  0xea   :  { %v425_v33 = vpop.f32.mrf.mxu0  ;;  %v433_v34 = vpop.f32.mrf.mxu1 }
  0xeb   :  { %351 = vst [vmem:[%s589_s3 + $0x8] sm:$0xff] %v335_v31  ;;  %359 = vst [vmem:[%s589_s3 + $0x48] sm:$0xff] %v343_v32  ;;  %v340_v35 = vadd.f32 %v425_v33, %v386_v16  ;;  %v348_v36 = vadd.f32 %v433_v34, %v386_v16 }
  0xec   :  { %v229_v37 = vpop.f32.mrf.mxu0  ;;  %v261_v38 = vpop.f32.mrf.mxu1 }
  0xed   :  { %356 = vst [vmem:[%s589_s3 + $0x30] sm:$0xff] %v340_v35  ;;  %364 = vst [vmem:[%s589_s3 + $0x70] sm:$0xff] %v348_v36  ;;  %v338_v39 = vadd.f32 %v386_v16, %v229_v37  ;;  %v346_v40 = vadd.f32 %v386_v16, %v261_v38 }
  0xee   :  { %v426_v41 = vpop.f32.mrf.mxu0  ;;  %v434_v42 = vpop.f32.mrf.mxu1 }
  0xef   :  { %354 = vst [vmem:[%s589_s3 + $0x20] sm:$0xff] %v338_v39  ;;  %362 = vst [vmem:[%s589_s3 + $0x60] sm:$0xff] %v346_v40  ;;  %v341_v43 = vadd.f32 %v426_v41, %v386_v16  ;;  %v349_v44 = vadd.f32 %v434_v42, %v386_v16 }
  0xf0   :  { %v232_v45 = vpop.f32.mrf.mxu0  ;;  %v264_v46 = vpop.f32.mrf.mxu1 }
  0xf1   :  { %357 = vst [vmem:[%s589_s3 + $0x38] sm:$0xff] %v341_v43  ;;  %365 = vst [vmem:[%s589_s3 + $0x78] sm:$0xff] %v349_v44  ;;  %v339_v47 = vadd.f32 %v386_v16, %v232_v45  ;;  %v347_v48 = vadd.f32 %v386_v16, %v264_v46 }
  0xf3   :  { %355 = vst [vmem:[%s589_s3 + $0x28] sm:$0xff] %v339_v47  ;;  %363 = vst [vmem:[%s589_s3 + $0x68] sm:$0xff] %v347_v48 }

// kernel: _lambda_.5
= control target key start
LH: loop header
LB: loop body
LE: loop exit
PB: predicated region body
PF: predicated region fallthrough
CT: control target
= control target key end

     0   :  { %s1499_s12 = smov 0   ;;  %s1501_s13 = smov 0   ;;  %s1636_s0 = inlined_call_operand.vmem [shape: bf16[512,128], index: 0, kind: input, shape index: {}]   ;;  %s1637_s1 = inlined_call_operand.vmem [shape: bf16[128,128], index: 1, kind: input, shape index: {}]   ;;  %s1638_s2 = inlined_call_operand.vmem [shape: f32[1,128], index: 2, kind: input, shape index: {}]   ;;  %s1639_s3 = inlined_call_operand.vmem [shape: bf16[512,128], index: 3, kind: output, shape index: {}]  }
   0x1   :  { %s1503_s14 = smov 0  }
   0x2 LB: > { %s32_s15 = sadd.s32 1, %s1473_s13  ;;  %p1128_p0 = scmp.ge.s32.totalorder %s1477_s14, 1  ;;  %s1477_s14 = sphi %s1503_s14, %s13_s14   ;;  %s1473_s13 = sphi %s1501_s13, %s1641_s13   ;;  %s1469_s12 = sphi %s1499_s12, %s1640_s12  }
   0x3   : > { %p34_p1 = scmp.ge.s32.totalorder %s32_s15, 2  ;;  %p188_p2 = scmp.lt.s32.totalorder %s1477_s14, 3 }
   0x5   : > { %s1643_s15 = smov (%p34_p1, %s32_s15), 0  ;;  %p189_p3 = pnand %p1128_p0, %p188_p2 }
   0x6   : > { %s1129_s18 = sshll.u32 (!%p189_p3), %s1469_s12, 5 }
   0x7   : > { %192 = sbr.rel (%p189_p3) target bundleno = 275 (0x113), region = 32  ;;  %p230_p4 = scmp.lt.s32.totalorder (!%p189_p3), %s1129_s18, 63 }
   0xc   : > { %v1431_v0 = vld [vmem:[%s1637_s1 + $0x38] sm:$0xff]   ;;  %v1432_v1 = vld [vmem:[%s1637_s1 + $0x30] sm:$0xff]   ;;  %s1645_s18 = smov (!%p230_p4, %s1129_s18), 63  ;;  %v1433_v2 = vld [vmem:[%s1637_s1 + $0x28] sm:$0xff]  }
   0xd   : > { %1343 = vmatprep.subr.bf16.mxu0 %v1431_v0  ;;  %1391 = vmatprep.subr.bf16.mxu1 %v1431_v0  ;;  %s1130_s23 = sshll.u32 %s1645_s18, 2  ;;  %v1434_v3 = vld [vmem:[%s1637_s1 + $0x20] sm:$0xff]   ;;  %v1435_v6 = vld [vmem:[%s1637_s1 + $0x18] sm:$0xff]   ;;  %v1436_v7 = vld [vmem:[%s1637_s1 + $0x10] sm:$0xff]  }
   0xe   : > { %1344 = vmatpush3.bf16.msra.mxu0 %v1431_v0  ;;  %1399 = vmatpush3.bf16.msra.mxu1 %v1431_v0  ;;  %s1534_s26 = scalar_lea.vmem %s1636_s0, %s1130_s23  ;;  %v1437_v8 = vld [vmem:[%s1637_s1 + $0x8] sm:$0xff]   ;;  %v1438_v9 = vld [vmem:[%s1637_s1] sm:$0xff]   ;;  %s1585_s17 = scalar_lea.vmem %s1639_s3, %s1130_s23 }
   0xf   : > { %1345 = vmatprep.subr.bf16.mxu0 %v1432_v1  ;;  %1392 = vmatprep.subr.bf16.mxu1 %v1432_v1  ;;  %v1439_v4 = vld [vmem:[%s1534_s26] sm:$0xff]   ;;  %v1441_v10 = vld [vmem:[%s1534_s26 + $0x8] sm:$0xff]   ;;  %v1443_v12 = vld [vmem:[%s1534_s26 + $0x10] sm:$0xff]  }
  0x10   : > { %v1440_v5 = vld [vmem:[%s1534_s26 + $0x40] sm:$0xff]   ;;  %1359 = vmatprep.mubr.bf16.mxu0 %v1439_v4  ;;  %v1442_v11 = vld [vmem:[%s1534_s26 + $0x48] sm:$0xff]   ;;  %v1444_v13 = vld [vmem:[%s1534_s26 + $0x50] sm:$0xff]  }
  0x11   : > { %1375 = vmatprep.mubr.bf16.mxu1 %v1440_v5  ;;  %v1445_v14 = vld [vmem:[%s1534_s26 + $0x18] sm:$0xff]   ;;  %v1447_v16 = vld [vmem:[%s1534_s26 + $0x20] sm:$0xff]   ;;  %v1449_v18 = vld [vmem:[%s1534_s26 + $0x28] sm:$0xff]  }
  0x12   : > { %1346 = vmatpush3.bf16.msra.mxu0 %v1432_v1  ;;  %1400 = vmatpush3.bf16.msra.mxu1 %v1432_v1  ;;  %v1446_v15 = vld [vmem:[%s1534_s26 + $0x58] sm:$0xff]   ;;  %v1448_v17 = vld [vmem:[%s1534_s26 + $0x60] sm:$0xff]   ;;  %v1450_v19 = vld [vmem:[%s1534_s26 + $0x68] sm:$0xff]  }
  0x13   : > { %1347 = vmatprep.subr.bf16.mxu0 %v1433_v2  ;;  %1393 = vmatprep.subr.bf16.mxu1 %v1433_v2  ;;  %v1451_v20 = vld [vmem:[%s1534_s26 + $0x30] sm:$0xff]   ;;  %v1453_v22 = vld [vmem:[%s1534_s26 + $0x38] sm:$0xff]   ;;  %v1570_v24 = vld [vmem:[%s1638_s2] ss:$0 sm:$0xff] }
  0x14   : > { %v1452_v21 = vld [vmem:[%s1534_s26 + $0x70] sm:$0xff]   ;;  %v1454_v23 = vld [vmem:[%s1534_s26 + $0x78] sm:$0xff]  }
  0x16   : > { %1348 = vmatpush3.bf16.msra.mxu0 %v1433_v2  ;;  %1401 = vmatpush3.bf16.msra.mxu1 %v1433_v2 }
  0x17   : > { %1349 = vmatprep.subr.bf16.mxu0 %v1434_v3  ;;  %1394 = vmatprep.subr.bf16.mxu1 %v1434_v3 }
  0x1a   : > { %1350 = vmatpush3.bf16.msra.mxu0 %v1434_v3  ;;  %1402 = vmatpush3.bf16.msra.mxu1 %v1434_v3 }
  0x1b   : > { %1351 = vmatprep.subr.bf16.mxu0 %v1435_v6  ;;  %1395 = vmatprep.subr.bf16.mxu1 %v1435_v6 }
  0x1e   : > { %1352 = vmatpush3.bf16.msra.mxu0 %v1435_v6  ;;  %1403 = vmatpush3.bf16.msra.mxu1 %v1435_v6 }
  0x1f   : > { %1353 = vmatprep.subr.bf16.mxu0 %v1436_v7  ;;  %1396 = vmatprep.subr.bf16.mxu1 %v1436_v7 }
  0x22   : > { %1354 = vmatpush3.bf16.msra.mxu0 %v1436_v7  ;;  %1404 = vmatpush3.bf16.msra.mxu1 %v1436_v7 }
  0x23   : > { %1355 = vmatprep.subr.bf16.mxu0 %v1437_v8  ;;  %1397 = vmatprep.subr.bf16.mxu1 %v1437_v8 }
  0x26   : > { %1356 = vmatpush3.bf16.msra.mxu0 %v1437_v8  ;;  %1405 = vmatpush3.bf16.msra.mxu1 %v1437_v8 }
  0x27   : > { %1357 = vmatprep.subr.bf16.mxu0 %v1438_v9  ;;  %1398 = vmatprep.subr.bf16.mxu1 %v1438_v9 }
  0x2a   : > { %1358 = vmatpush3.bf16.msra.mxu0 %v1438_v9  ;;  %1406 = vmatpush3.bf16.msra.mxu1 %v1438_v9 }
  0x2d   : > { %1360 = vmatmul.mubr.bf16.vlgmr.msra.gmra.mxu0 %v1441_v10  ;;  %1376 = vmatmul.mubr.bf16.vlgmr.msra.gmra.mxu1 %v1442_v11 }
  0x2e   : > { %1363 = vmatprep.mubr.bf16.mxu0 %v1443_v12  ;;  %1379 = vmatprep.mubr.bf16.mxu1 %v1444_v13 }
  0x35   : > { %1364 = vmatmul.mubr.bf16.gmra.mxu0 %v1445_v14  ;;  %1380 = vmatmul.mubr.bf16.gmra.mxu1 %v1446_v15 }
  0x36   : > { %1367 = vmatprep.mubr.bf16.mxu0 %v1447_v16  ;;  %1383 = vmatprep.mubr.bf16.mxu1 %v1448_v17 }
  0x3d   : > { %1368 = vmatmul.mubr.bf16.gmra.mxu0 %v1449_v18  ;;  %1384 = vmatmul.mubr.bf16.gmra.mxu1 %v1450_v19 }
  0x3e   : > { %1371 = vmatprep.mubr.bf16.mxu0 %v1451_v20  ;;  %1387 = vmatprep.mubr.bf16.mxu1 %v1452_v21 }
  0x45   : > { %1372 = vmatmul.mubr.bf16.gmra.mxu0 %v1453_v22  ;;  %1388 = vmatmul.mubr.bf16.gmra.mxu1 %v1454_v23 }
  0xed   : > { %v1361_v25 = vpop.f32.mrf.mxu0  ;;  %v1377_v26 = vpop.f32.mrf.mxu1 }
  0xee   : > { %v789_v27 = vadd.f32 %v1361_v25, %v1570_v24  ;;  %v805_v28 = vadd.f32 %v1377_v26, %v1570_v24 }
  0xef   : > { %v554_v29 = vpop.f32.mrf.mxu0  ;;  %v618_v30 = vpop.f32.mrf.mxu1 }
  0xf0   : > { %v787_v31 = vadd.f32 %v1570_v24, %v554_v29  ;;  %v803_v32 = vadd.f32 %v1570_v24, %v618_v30  ;;  %v821_v37 = vmax.f32 %v789_v27, 0.0  ;;  %v837_v38 = vmax.f32 %v805_v28, 0.0 }
  0xf1   : > { %v1362_v33 = vpop.f32.mrf.mxu0  ;;  %v1378_v34 = vpop.f32.mrf.mxu1 }
  0xf2   : > { %v790_v35 = vadd.f32 %v1362_v33, %v1570_v24  ;;  %v806_v36 = vadd.f32 %v1378_v34, %v1570_v24  ;;  %v819_v45 = vmax.f32 %v787_v31, 0.0  ;;  %v835_v46 = vmax.f32 %v803_v32, 0.0 }
  0xf3   : > { %v557_v39 = vpop.f32.mrf.mxu0  ;;  %v621_v40 = vpop.f32.mrf.mxu1 }
  0xf4   : > { %v822_v41 = vmax.f32 %v790_v35, 0.0  ;;  %v838_v42 = vmax.f32 %v806_v36, 0.0  ;;  %v788_v43 = vadd.f32 %v1570_v24, %v557_v39  ;;  %v804_v44 = vadd.f32 %v1570_v24, %v621_v40 }
  0xf5   : > { %v1365_v47 = vpop.f32.mrf.mxu0  ;;  %v1381_v48 = vpop.f32.mrf.mxu1 }
  0xf6   : > { %v1232_v49 = vpack.c.bf16 %v822_v41, %v821_v37  ;;  %v1272_v50 = vpack.c.bf16 %v838_v42, %v837_v38  ;;  %v820_v51 = vmax.f32 %v788_v43, 0.0  ;;  %v836_v52 = vmax.f32 %v804_v44, 0.0 }
  0xf7   : > { %v793_v53 = vadd.f32 %v1365_v47, %v1570_v24  ;;  %v809_v54 = vadd.f32 %v1381_v48, %v1570_v24  ;;  %v570_v55 = vpop.f32.mrf.mxu0  ;;  %v634_v56 = vpop.f32.mrf.mxu1 }
  0xf8   : > { %1304 = vst [vmem:[%s1585_s17 + $0x8] sm:$0xff] %v1232_v49   ;;  %1312 = vst [vmem:[%s1585_s17 + $0x48] sm:$0xff] %v1272_v50   ;;  %v1227_v57 = vpack.c.bf16 %v820_v51, %v819_v45  ;;  %v1267_v58 = vpack.c.bf16 %v836_v52, %v835_v46  ;;  %v791_v59 = vadd.f32 %v1570_v24, %v570_v55 }
  0xf9   : > { %v807_v60 = vadd.f32 %v1570_v24, %v634_v56  ;;  %v1366_v61 = vpop.f32.mrf.mxu0  ;;  %v1382_v62 = vpop.f32.mrf.mxu1  ;;  %v825_v1 = vmax.f32 %v793_v53, 0.0  ;;  %v841_v2 = vmax.f32 %v809_v54, 0.0 }
  0xfa   : > { %1228 = vst [vmem:[%s1585_s17] sm:$0xff] %v1227_v57   ;;  %1311 = vst [vmem:[%s1585_s17 + $0x40] sm:$0xff] %v1267_v58   ;;  %v794_v63 = vadd.f32 %v1366_v61, %v1570_v24  ;;  %v810_v0 = vadd.f32 %v1382_v62, %v1570_v24  ;;  %v823_v9 = vmax.f32 %v791_v59, 0.0 }
  0xfb   : > { %v573_v3 = vpop.f32.mrf.mxu0  ;;  %v637_v4 = vpop.f32.mrf.mxu1  ;;  %v839_v10 = vmax.f32 %v807_v60, 0.0 }
  0xfc   : > { %v826_v5 = vmax.f32 %v794_v63, 0.0  ;;  %v842_v6 = vmax.f32 %v810_v0, 0.0  ;;  %v792_v7 = vadd.f32 %v1570_v24, %v573_v3  ;;  %v808_v8 = vadd.f32 %v1570_v24, %v637_v4 }
  0xfd   : > { %v1369_v11 = vpop.f32.mrf.mxu0  ;;  %v1385_v12 = vpop.f32.mrf.mxu1 }
  0xfe   : > { %v1242_v13 = vpack.c.bf16 %v826_v5, %v825_v1  ;;  %v1282_v14 = vpack.c.bf16 %v842_v6, %v841_v2  ;;  %v824_v15 = vmax.f32 %v792_v7, 0.0  ;;  %v840_v16 = vmax.f32 %v808_v8, 0.0 }
  0xff   : > { %v797_v17 = vadd.f32 %v1369_v11, %v1570_v24  ;;  %v813_v18 = vadd.f32 %v1385_v12, %v1570_v24  ;;  %v586_v19 = vpop.f32.mrf.mxu0  ;;  %v650_v20 = vpop.f32.mrf.mxu1 }
 0x100   : > { %1306 = vst [vmem:[%s1585_s17 + $0x18] sm:$0xff] %v1242_v13   ;;  %1314 = vst [vmem:[%s1585_s17 + $0x58] sm:$0xff] %v1282_v14   ;;  %v1237_v21 = vpack.c.bf16 %v824_v15, %v823_v9  ;;  %v1277_v22 = vpack.c.bf16 %v840_v16, %v839_v10  ;;  %v795_v23 = vadd.f32 %v1570_v24, %v586_v19 }
 0x101   : > { %v811_v25 = vadd.f32 %v1570_v24, %v650_v20  ;;  %v1370_v26 = vpop.f32.mrf.mxu0  ;;  %v1386_v27 = vpop.f32.mrf.mxu1  ;;  %v829_v30 = vmax.f32 %v797_v17, 0.0  ;;  %v845_v31 = vmax.f32 %v813_v18, 0.0 }
 0x102   : > { %1305 = vst [vmem:[%s1585_s17 + $0x10] sm:$0xff] %v1237_v21   ;;  %1313 = vst [vmem:[%s1585_s17 + $0x50] sm:$0xff] %v1277_v22   ;;  %v798_v28 = vadd.f32 %v1370_v26, %v1570_v24  ;;  %v814_v29 = vadd.f32 %v1386_v27, %v1570_v24  ;;  %v827_v38 = vmax.f32 %v795_v23, 0.0 }
 0x103   : > { %v589_v32 = vpop.f32.mrf.mxu0  ;;  %v653_v33 = vpop.f32.mrf.mxu1  ;;  %v843_v39 = vmax.f32 %v811_v25, 0.0 }
 0x104   : > { %v830_v34 = vmax.f32 %v798_v28, 0.0  ;;  %v846_v35 = vmax.f32 %v814_v29, 0.0  ;;  %v796_v36 = vadd.f32 %v1570_v24, %v589_v32  ;;  %v812_v37 = vadd.f32 %v1570_v24, %v653_v33 }
 0x105   : > { %v1373_v40 = vpop.f32.mrf.mxu0  ;;  %v1389_v41 = vpop.f32.mrf.mxu1 }
 0x106   : > { %v1252_v42 = vpack.c.bf16 %v830_v34, %v829_v30  ;;  %v1292_v43 = vpack.c.bf16 %v846_v35, %v845_v31  ;;  %v828_v44 = vmax.f32 %v796_v36, 0.0  ;;  %v844_v45 = vmax.f32 %v812_v37, 0.0 }
 0x107   : > { %v801_v46 = vadd.f32 %v1373_v40, %v1570_v24  ;;  %v817_v47 = vadd.f32 %v1389_v41, %v1570_v24  ;;  %v602_v48 = vpop.f32.mrf.mxu0  ;;  %v666_v49 = vpop.f32.mrf.mxu1 }
 0x108   : > { %1308 = vst [vmem:[%s1585_s17 + $0x28] sm:$0xff] %v1252_v42   ;;  %1316 = vst [vmem:[%s1585_s17 + $0x68] sm:$0xff] %v1292_v43   ;;  %v1247_v50 = vpack.c.bf16 %v828_v44, %v827_v38  ;;  %v1287_v51 = vpack.c.bf16 %v844_v45, %v843_v39  ;;  %v799_v52 = vadd.f32 %v1570_v24, %v602_v48 }
 0x109   : > { %v815_v53 = vadd.f32 %v1570_v24, %v666_v49  ;;  %v1374_v54 = vpop.f32.mrf.mxu0  ;;  %v1390_v55 = vpop.f32.mrf.mxu1  ;;  %v833_v58 = vmax.f32 %v801_v46, 0.0  ;;  %v849_v59 = vmax.f32 %v817_v47, 0.0 }
 0x10a   : > { %1307 = vst [vmem:[%s1585_s17 + $0x20] sm:$0xff] %v1247_v50   ;;  %1315 = vst [vmem:[%s1585_s17 + $0x60] sm:$0xff] %v1287_v51   ;;  %v802_v56 = vadd.f32 %v1374_v54, %v1570_v24  ;;  %v818_v57 = vadd.f32 %v1390_v55, %v1570_v24  ;;  %v831_v2 = vmax.f32 %v799_v52, 0.0 }
 0x10b   : > { %v605_v60 = vpop.f32.mrf.mxu0  ;;  %v669_v61 = vpop.f32.mrf.mxu1  ;;  %v847_v3 = vmax.f32 %v815_v53, 0.0 }
 0x10c   : > { %v834_v62 = vmax.f32 %v802_v56, 0.0  ;;  %v850_v63 = vmax.f32 %v818_v57, 0.0  ;;  %v800_v0 = vadd.f32 %v1570_v24, %v605_v60  ;;  %v816_v1 = vadd.f32 %v1570_v24, %v669_v61 }
 0x10e   : > { %v1262_v4 = vpack.c.bf16 %v834_v62, %v833_v58  ;;  %v1302_v5 = vpack.c.bf16 %v850_v63, %v849_v59  ;;  %v832_v6 = vmax.f32 %v800_v0, 0.0  ;;  %v848_v7 = vmax.f32 %v816_v1, 0.0 }
 0x110   : > { %1310 = vst [vmem:[%s1585_s17 + $0x38] sm:$0xff] %v1262_v4   ;;  %1318 = vst [vmem:[%s1585_s17 + $0x78] sm:$0xff] %v1302_v5   ;;  %v1257_v8 = vpack.c.bf16 %v832_v6, %v831_v2  ;;  %v1297_v9 = vpack.c.bf16 %v848_v7, %v847_v3 }
 0x112   : > { %1309 = vst [vmem:[%s1585_s17 + $0x30] sm:$0xff] %v1257_v8   ;;  %1317 = vst [vmem:[%s1585_s17 + $0x70] sm:$0xff] %v1297_v9  }
 0x113 PF: > { %s13_s14 = sadd.s32 1, %s1477_s14   ;;  %s1640_s12 = smov %s1473_s13 }
 0x114   : > { %p10_p5 = scmp.ge.s32.totalorder %s13_s14, 4   ;;  %s1641_s13 = smov %s1643_s15 }
 0x116   :  { %12 = sbr.rel (!%p10_p5) target bundleno = 2 (0x2), region = 76 }

// kernel: _lambda_.6
= control target key start
LH: loop header
LB: loop body
LE: loop exit
PB: predicated region body
PF: predicated region fallthrough
CT: control target
= control target key end

     0   :  { %s1192_s12 = smov 0   ;;  %s1194_s13 = smov 0   ;;  %s1324_s0 = inlined_call_operand.vmem [shape: bf16[128,1152], index: 0, kind: input, shape index: {}]   ;;  %s1325_s1 = inlined_call_operand.vmem [shape: bf16[1152,128], index: 1, kind: input, shape index: {}]   ;;  %s1326_s2 = inlined_call_operand.vmem [shape: f32[1,128], index: 2, kind: input, shape index: {}]   ;;  %s1327_s3 = inlined_call_operand.vmem [shape: bf16[128,128], index: 3, kind: output, shape index: {}]  }
   0x1   :  { %s1196_s14 = smov 0   ;;  %s1198_s15 = smov 0  }
   0x2   :  { %s1200_s16 = smov 0  }
   0x3 LB: > { %s25_s17 = sadd.s32 1, %s1165_s15  ;;  %p48_p1 = scmp.ne.s32.totalorder %s1157_s13, %s1153_s12  ;;  %s1169_s16 = sphi %s1200_s16, %s13_s16   ;;  %s1165_s15 = sphi %s1198_s15, %s1331_s15   ;;  %s1161_s14 = sphi %s1196_s14, %s1330_s14   ;;  %s1157_s13 = sphi %s1194_s13, %s1329_s13   ;;  %s1153_s12 = sphi %s1192_s12, %s1328_s12  }
   0x4   : > { %p26_p0 = scmp.ge.s32.totalorder %s25_s17, 9  ;;  %p49_p2 = scmp.eq.s32.totalorder %s1169_s16, 0 }
   0x5   : > { %s41_s19 = sadd.s32 1, %s1157_s13  ;;  %p901_p5 = scmp.ge.s32.totalorder %s1169_s16, 9 }
   0x6   : > { %s1333_s17 = smov (%p26_p0, %s25_s17), 0  ;;  %p50_p3 = por %p49_p2, %p48_p1 }
   0x7   : > { %s37_s18 = ssub.s32 %s1165_s15, %s1333_s17  ;;  %162 = sbr.rel (%p901_p5) target bundleno = 26 (0x1a), region = 20 }
   0x8   : > { %p39_p4 = scmp.eq.s32.totalorder %s37_s18, 0 }
   0xa   : > { %s1227_s20 = scalar_select %p39_p4, %s1157_s13, %s41_s19  }
   0xc   : > { %165 = sbr.rel (!%p50_p3) target bundleno = 26 (0x1a), region = 24  ;;  %s167_s21 = sand.u32 (%p50_p3), 1, %s1157_s13  }
   0xd   : > { %s903_s22 = sshll.u32 (%p50_p3), %s1165_s15, 2  ;;  %s902_s23 = sshll.u32 (%p50_p3), %s167_s21, 6 }
   0xe   : > { %s1235_s26 = scalar_lea.vmem (%p50_p3), %s1324_s0, %s903_s22  ;;  %s169_s27 = scalar_lea.vmem (%p50_p3), [#allocation3], %s902_s23 }
   0xf   : > { %v191_v0 = vld [vmem:[%s1235_s26] sm:$0xf] (%p50_p3)  ;;  %v193_v1 = vld [vmem:[%s1235_s26 + $0x24] sm:$0xf] (%p50_p3)  ;;  %v195_v2 = vld [vmem:[%s1235_s26 + $0x48] sm:$0xf] (%p50_p3) }
  0x10   : > { %192 = vst [vmem:[%s169_s27] sm:$0xf] (%p50_p3), %v191_v0  ;;  %194 = vst [vmem:[%s169_s27 + $0x4] sm:$0xf] (%p50_p3), %v193_v1  ;;  %v197_v3 = vld [vmem:[%s1235_s26 + $0x6c] sm:$0xf] (%p50_p3) }
  0x11   : > { %v199_v4 = vld [vmem:[%s1235_s26 + $0x90] sm:$0xf]  ;;  %196 = vst [vmem:[%s169_s27 + $0x8] sm:$0xf] %v195_v2  ;;  %198 = vst [vmem:[%s169_s27 + $0xc] sm:$0xf] %v197_v3 }
  0x12   : > { %200 = vst [vmem:[%s169_s27 + $0x10] sm:$0xf] %v199_v4  ;;  %v201_v5 = vld [vmem:[%s1235_s26 + $0xb4] sm:$0xf]  ;;  %v203_v6 = vld [vmem:[%s1235_s26 + $0xd8] sm:$0xf] }
  0x13   : > { %v205_v7 = vld [vmem:[%s1235_s26 + $0xfc] sm:$0xf]  ;;  %202 = vst [vmem:[%s169_s27 + $0x14] sm:$0xf] %v201_v5  ;;  %204 = vst [vmem:[%s169_s27 + $0x18] sm:$0xf] %v203_v6 }
  0x14   : > { %206 = vst [vmem:[%s169_s27 + $0x1c] sm:$0xf] %v205_v7  ;;  %v207_v8 = vld [vmem:[%s1235_s26 + $0x120] sm:$0xf]  ;;  %v209_v9 = vld [vmem:[%s1235_s26 + $0x144] sm:$0xf] }
  0x15   : > { %v211_v10 = vld [vmem:[%s1235_s26 + $0x168] sm:$0xf]  ;;  %208 = vst [vmem:[%s169_s27 + $0x20] sm:$0xf] %v207_v8  ;;  %210 = vst [vmem:[%s169_s27 + $0x24] sm:$0xf] %v209_v9 }
  0x16   : > { %212 = vst [vmem:[%s169_s27 + $0x28] sm:$0xf] %v211_v10  ;;  %v213_v11 = vld [vmem:[%s1235_s26 + $0x18c] sm:$0xf]  ;;  %v215_v12 = vld [vmem:[%s1235_s26 + $0x1b0] sm:$0xf] }
  0x17   : > { %v217_v13 = vld [vmem:[%s1235_s26 + $0x1d4] sm:$0xf]  ;;  %214 = vst [vmem:[%s169_s27 + $0x2c] sm:$0xf] %v213_v11  ;;  %216 = vst [vmem:[%s169_s27 + $0x30] sm:$0xf] %v215_v12 }
  0x18   : > { %218 = vst [vmem:[%s169_s27 + $0x34] sm:$0xf] %v217_v13  ;;  %v219_v14 = vld [vmem:[%s1235_s26 + $0x1f8] sm:$0xf]  ;;  %v221_v15 = vld [vmem:[%s1235_s26 + $0x21c] sm:$0xf] }
  0x19   : > { %220 = vst [vmem:[%s169_s27 + $0x38] sm:$0xf] %v219_v14  ;;  %222 = vst [vmem:[%s169_s27 + $0x3c] sm:$0xf] %v221_v15 }
  0x1a PF: > { %p904_p6 = scmp.ge.s32.totalorder %s1169_s16, 1  ;;  %p289_p7 = scmp.lt.s32.totalorder %s1169_s16, 10 }
  0x1c   : > { %p290_p8 = pnand %p904_p6, %p289_p7 }
  0x1d   : > { %s296_s28 = sand.u32 (!%p290_p8), 1, %s1153_s12   ;;  %s906_s29 = sshll.u32 (!%p290_p8), %s1161_s14, 4 }
  0x1e   : > { %293 = sbr.rel (%p290_p8) target bundleno = 308 (0x134), region = 69  ;;  %s905_s30 = sshll.u32 (!%p290_p8), %s296_s28, 6 }
  0x1f   : > { %p335_p9 = scmp.lt.s32.totalorder (!%p290_p8), %s906_s29, 143  ;;  %s1262_s8 = scalar_lea.vmem (!%p290_p8), [#allocation3], %s905_s30 }
  0x20   : > { %p908_p10 = scmp.ne.s32.totalorder (!%p290_p8), %s1161_s14, 0 }
  0x23   : > { %s1335_s29 = smov (!%p335_p9, %s906_s29), 143  ;;  %359 = sbr.rel (%p908_p10) target bundleno = 49 (0x31), region = 77 }
  0x24   : > { %s907_s4 = sshll.u32 %s1335_s29, 2 }
  0x25   : > { %s1260_s7 = scalar_lea.vmem %s1325_s1, %s907_s4 }
  0x28   : > { %v1171_v16 = vmov 0.0  }
  0x29   : > { %360 = vst [vmem:[#allocation2 + $0x30] sm:$0xff] %v1171_v16  ;;  %361 = vst [vmem:[#allocation2] sm:$0xff] %v1171_v16 }
  0x2a   : > { %362 = vst [vmem:[#allocation2 + $0x58] sm:$0xff] %v1171_v16  ;;  %363 = vst [vmem:[#allocation2 + $0x18] sm:$0xff] %v1171_v16 }
  0x2b   : > { %364 = vst [vmem:[#allocation2 + $0x50] sm:$0xff] %v1171_v16  ;;  %365 = vst [vmem:[#allocation2 + $0x68] sm:$0xff] %v1171_v16 }
  0x2c   : > { %366 = vst [vmem:[#allocation2 + $0x8] sm:$0xff] %v1171_v16  ;;  %367 = vst [vmem:[#allocation2 + $0x48] sm:$0xff] %v1171_v16 }
  0x2d   : > { %368 = vst [vmem:[#allocation2 + $0x40] sm:$0xff] %v1171_v16  ;;  %369 = vst [vmem:[#allocation2 + $0x20] sm:$0xff] %v1171_v16 }
  0x2e   : > { %370 = vst [vmem:[#allocation2 + $0x10] sm:$0xff] %v1171_v16  ;;  %371 = vst [vmem:[#allocation2 + $0x38] sm:$0xff] %v1171_v16 }
  0x2f   : > { %372 = vst [vmem:[#allocation2 + $0x60] sm:$0xff] %v1171_v16  ;;  %373 = vst [vmem:[#allocation2 + $0x70] sm:$0xff] %v1171_v16 }
  0x30   : > { %374 = vst [vmem:[#allocation2 + $0x78] sm:$0xff] %v1171_v16  ;;  %375 = vst [vmem:[#allocation2 + $0x28] sm:$0xff] %v1171_v16 }
  0x31 PF: > { %v1115_v17 = vld [vmem:[%s1260_s7 + $0x38] sm:$0xff]   ;;  %v1116_v18 = vld [vmem:[%s1260_s7 + $0x30] sm:$0xff]   ;;  %v1117_v19 = vld [vmem:[%s1260_s7 + $0x28] sm:$0xff]   ;;  %p925_p11 = scmp.ne.s32.totalorder %s1161_s14, 8 }
  0x32   : > { %1026 = vmatprep.subr.bf16.mxu0 %v1115_v17  ;;  %1058 = vmatprep.subr.bf16.mxu1 %v1115_v17  ;;  %v1118_v20 = vld [vmem:[%s1260_s7 + $0x20] sm:$0xff]   ;;  %v1119_v23 = vld [vmem:[%s1260_s7 + $0x18] sm:$0xff]   ;;  %v1120_v24 = vld [vmem:[%s1260_s7 + $0x10] sm:$0xff]  }
  0x33   : > { %1027 = vmatpush3.bf16.msra.mxu0 %v1115_v17  ;;  %1066 = vmatpush3.bf16.msra.mxu1 %v1115_v17  ;;  %v1123_v21 = vld [vmem:[%s1262_s8] sm:$0xff]   ;;  %v1121_v25 = vld [vmem:[%s1260_s7 + $0x8] sm:$0xff]   ;;  %v1127_v29 = vld [vmem:[%s1262_s8 + $0x10] sm:$0xff]  }
  0x34   : > { %1028 = vmatprep.subr.bf16.mxu0 %v1116_v18  ;;  %1059 = vmatprep.subr.bf16.mxu1 %v1116_v18  ;;  %v1124_v22 = vld [vmem:[%s1262_s8 + $0x20] sm:$0xff]   ;;  %v1125_v27 = vld [vmem:[%s1262_s8 + $0x8] sm:$0xff]   ;;  %v1128_v30 = vld [vmem:[%s1262_s8 + $0x30] sm:$0xff]  }
  0x35   : > { %1042 = vmatprep.mubr.bf16.mxu0 %v1123_v21  ;;  %1050 = vmatprep.mubr.bf16.mxu1 %v1124_v22  ;;  %v1122_v26 = vld [vmem:[%s1260_s7] sm:$0xff]   ;;  %v1126_v28 = vld [vmem:[%s1262_s8 + $0x28] sm:$0xff]   ;;  %v1129_v31 = vld [vmem:[%s1262_s8 + $0x18] sm:$0xff]  }
  0x36   : > { %v1130_v32 = vld [vmem:[%s1262_s8 + $0x38] sm:$0xff]   ;;  %v386_v34 = vld [vmem:[#allocation2 + $0x10] sm:$0xff]  ;;  %v384_v38 = vld [vmem:[#allocation2 + $0x40] sm:$0xff] }
  0x37   : > { %1029 = vmatpush3.bf16.msra.mxu0 %v1116_v18  ;;  %1067 = vmatpush3.bf16.msra.mxu1 %v1116_v18  ;;  %v378_v33 = vld [vmem:[#allocation2 + $0x58] sm:$0xff]  ;;  %v376_v37 = vld [vmem:[#allocation2 + $0x30] sm:$0xff]  ;;  %v377_v49 = vld [vmem:[#allocation2] sm:$0xff] }
  0x38   : > { %1030 = vmatprep.subr.bf16.mxu0 %v1117_v19  ;;  %1060 = vmatprep.subr.bf16.mxu1 %v1117_v19  ;;  %v379_v43 = vld [vmem:[#allocation2 + $0x18] sm:$0xff]  ;;  %v385_v50 = vld [vmem:[#allocation2 + $0x20] sm:$0xff]  ;;  %v382_v55 = vld [vmem:[#allocation2 + $0x8] sm:$0xff] }
  0x39   : > { %v387_v44 = vld [vmem:[#allocation2 + $0x38] sm:$0xff]  ;;  %v380_v61 = vld [vmem:[#allocation2 + $0x50] sm:$0xff]  ;;  %v388_v62 = vld [vmem:[#allocation2 + $0x60] sm:$0xff] }
  0x3a   : > { %v390_v56 = vld [vmem:[#allocation2 + $0x78] sm:$0xff]  ;;  %v383_v3 = vld [vmem:[#allocation2 + $0x48] sm:$0xff]  ;;  %v389_v10 = vld [vmem:[#allocation2 + $0x70] sm:$0xff] }
  0x3b   : > { %1031 = vmatpush3.bf16.msra.mxu0 %v1117_v19  ;;  %1068 = vmatpush3.bf16.msra.mxu1 %v1117_v19  ;;  %v391_v4 = vld [vmem:[#allocation2 + $0x28] sm:$0xff] }
  0x3c   : > { %1032 = vmatprep.subr.bf16.mxu0 %v1118_v20  ;;  %1061 = vmatprep.subr.bf16.mxu1 %v1118_v20  ;;  %v381_v9 = vld [vmem:[#allocation2 + $0x68] sm:$0xff] }
  0x3f   : > { %1033 = vmatpush3.bf16.msra.mxu0 %v1118_v20  ;;  %1069 = vmatpush3.bf16.msra.mxu1 %v1118_v20 }
  0x40   : > { %1034 = vmatprep.subr.bf16.mxu0 %v1119_v23  ;;  %1062 = vmatprep.subr.bf16.mxu1 %v1119_v23 }
  0x43   : > { %1035 = vmatpush3.bf16.msra.mxu0 %v1119_v23  ;;  %1070 = vmatpush3.bf16.msra.mxu1 %v1119_v23 }
  0x44   : > { %1036 = vmatprep.subr.bf16.mxu0 %v1120_v24  ;;  %1063 = vmatprep.subr.bf16.mxu1 %v1120_v24 }
  0x47   : > { %1037 = vmatpush3.bf16.msra.mxu0 %v1120_v24  ;;  %1071 = vmatpush3.bf16.msra.mxu1 %v1120_v24 }
  0x48   : > { %1038 = vmatprep.subr.bf16.mxu0 %v1121_v25  ;;  %1064 = vmatprep.subr.bf16.mxu1 %v1121_v25 }
  0x4b   : > { %1039 = vmatpush3.bf16.msra.mxu0 %v1121_v25  ;;  %1072 = vmatpush3.bf16.msra.mxu1 %v1121_v25 }
  0x4c   : > { %1040 = vmatprep.subr.bf16.mxu0 %v1122_v26  ;;  %1065 = vmatprep.subr.bf16.mxu1 %v1122_v26 }
  0x4f   : > { %1041 = vmatpush3.bf16.msra.mxu0 %v1122_v26  ;;  %1073 = vmatpush3.bf16.msra.mxu1 %v1122_v26 }
  0x52   : > { %1043 = vmatmul.mubr.bf16.vlgmr.msra.gmra.mxu0 %v1125_v27  ;;  %1051 = vmatmul.mubr.bf16.vlgmr.msra.gmra.mxu1 %v1126_v28 }
  0x53   : > { %1046 = vmatprep.mubr.bf16.mxu0 %v1127_v29  ;;  %1054 = vmatprep.mubr.bf16.mxu1 %v1128_v30 }
  0x5a   : > { %1047 = vmatmul.mubr.bf16.gmra.mxu0 %v1129_v31  ;;  %1055 = vmatmul.mubr.bf16.gmra.mxu1 %v1130_v32 }
 0x112   : > { %v1044_v35 = vpop.f32.mrf.mxu0  ;;  %v1052_v36 = vpop.f32.mrf.mxu1 }
 0x113   : > { %v619_v39 = vadd.f32 %v1044_v35, %v378_v33  ;;  %v627_v40 = vadd.f32 %v1052_v36, %v386_v34 }
 0x114   : > { %v554_v41 = vpop.f32.mrf.mxu0  ;;  %v586_v42 = vpop.f32.mrf.mxu1 }
 0x115   : > { %635 = vst [vmem:[#allocation2 + $0x58] sm:$0xff] %v619_v39  ;;  %643 = vst [vmem:[#allocation2 + $0x10] sm:$0xff] %v627_v40  ;;  %v617_v45 = vadd.f32 %v554_v41, %v376_v37  ;;  %v625_v46 = vadd.f32 %v586_v42, %v384_v38 }
 0x116   : > { %v1045_v47 = vpop.f32.mrf.mxu0  ;;  %v1053_v48 = vpop.f32.mrf.mxu1 }
 0x117   : > { %633 = vst [vmem:[#allocation2 + $0x30] sm:$0xff] %v617_v45  ;;  %641 = vst [vmem:[#allocation2 + $0x40] sm:$0xff] %v625_v46  ;;  %v620_v51 = vadd.f32 %v1045_v47, %v379_v43  ;;  %v628_v52 = vadd.f32 %v1053_v48, %v387_v44 }
 0x118   : > { %v557_v53 = vpop.f32.mrf.mxu0  ;;  %v589_v54 = vpop.f32.mrf.mxu1 }
 0x119   : > { %636 = vst [vmem:[#allocation2 + $0x18] sm:$0xff] %v620_v51  ;;  %644 = vst [vmem:[#allocation2 + $0x38] sm:$0xff] %v628_v52  ;;  %v618_v57 = vadd.f32 %v557_v53, %v377_v49  ;;  %v626_v58 = vadd.f32 %v589_v54, %v385_v50 }
 0x11a   : > { %v1048_v59 = vpop.f32.mrf.mxu0  ;;  %v1056_v60 = vpop.f32.mrf.mxu1 }
 0x11b   : > { %634 = vst [vmem:[#allocation2] sm:$0xff] %v618_v57  ;;  %642 = vst [vmem:[#allocation2 + $0x20] sm:$0xff] %v626_v58  ;;  %v623_v63 = vadd.f32 %v1048_v59, %v382_v55  ;;  %v631_v0 = vadd.f32 %v1056_v60, %v390_v56 }
 0x11c   : > { %v570_v1 = vpop.f32.mrf.mxu0  ;;  %v602_v2 = vpop.f32.mrf.mxu1 }
 0x11d   : > { %639 = vst [vmem:[#allocation2 + $0x8] sm:$0xff] %v623_v63  ;;  %647 = vst [vmem:[#allocation2 + $0x78] sm:$0xff] %v631_v0  ;;  %v621_v5 = vadd.f32 %v570_v1, %v380_v61  ;;  %v629_v6 = vadd.f32 %v602_v2, %v388_v62 }
 0x11e   : > { %v1049_v7 = vpop.f32.mrf.mxu0  ;;  %v1057_v8 = vpop.f32.mrf.mxu1 }
 0x11f   : > { %637 = vst [vmem:[#allocation2 + $0x50] sm:$0xff] %v621_v5  ;;  %645 = vst [vmem:[#allocation2 + $0x60] sm:$0xff] %v629_v6  ;;  %v624_v11 = vadd.f32 %v1049_v7, %v383_v3  ;;  %v632_v12 = vadd.f32 %v1057_v8, %v391_v4  ;;  %652 = sbr.rel (%p925_p11) target bundleno = 308 (0x134), region = 81 }
 0x120   : > { %v573_v13 = vpop.f32.mrf.mxu0  ;;  %v605_v14 = vpop.f32.mrf.mxu1 }
 0x121   : > { %640 = vst [vmem:[#allocation2 + $0x48] sm:$0xff] %v624_v11  ;;  %648 = vst [vmem:[#allocation2 + $0x28] sm:$0xff] %v632_v12  ;;  %v622_v15 = vadd.f32 %v573_v13, %v381_v9  ;;  %v630_v16 = vadd.f32 %v605_v14, %v389_v10 }
 0x123   : > { %638 = vst [vmem:[#allocation2 + $0x68] sm:$0xff] %v622_v15  ;;  %646 = vst [vmem:[#allocation2 + $0x70] sm:$0xff] %v630_v16 }
 0x124   : > { %v653_v17 = vld [vmem:[#allocation2 + $0x30] sm:$0xff]  ;;  %v654_v18 = vld [vmem:[#allocation2] sm:$0xff]  ;;  %v655_v22 = vld [vmem:[#allocation2 + $0x58] sm:$0xff] }
 0x125   : > { %v926_v19 = vld [vmem:[%s1326_s2] ss:$0 sm:$0xff]  ;;  %v656_v23 = vld [vmem:[#allocation2 + $0x18] sm:$0xff]  ;;  %v659_v29 = vld [vmem:[#allocation2 + $0x8] sm:$0xff] }
 0x126   : > { %v676_v20 = vadd.f32 %v926_v19, %v653_v17  ;;  %v677_v21 = vadd.f32 %v926_v19, %v654_v18  ;;  %v657_v24 = vld [vmem:[#allocation2 + $0x50] sm:$0xff]  ;;  %v678_v25 = vadd.f32 %v926_v19, %v655_v22  ;;  %v679_v26 = vadd.f32 %v926_v19, %v656_v23  ;;  %v661_v35 = vld [vmem:[#allocation2 + $0x40] sm:$0xff]  ;;  %v664_v42 = vld [vmem:[#allocation2 + $0x38] sm:$0xff] }
 0x127   : > { %v680_v28 = vadd.f32 %v926_v19, %v657_v24  ;;  %v682_v34 = vadd.f32 %v926_v19, %v659_v29  ;;  %v662_v36 = vld [vmem:[#allocation2 + $0x20] sm:$0xff]  ;;  %v663_v37 = vld [vmem:[#allocation2 + $0x10] sm:$0xff]  ;;  %v684_v47 = vadd.f32 %v926_v19, %v661_v35  ;;  %v667_v53 = vld [vmem:[#allocation2 + $0x78] sm:$0xff]  ;;  %v687_v57 = vadd.f32 %v926_v19, %v664_v42 }
 0x128   : > { %v660_v30 = vld [vmem:[#allocation2 + $0x48] sm:$0xff]  ;;  %v692_v31 = vmax.f32 %v676_v20, 0.0  ;;  %v693_v32 = vmax.f32 %v677_v21, 0.0  ;;  %v694_v38 = vmax.f32 %v678_v25, 0.0  ;;  %v695_v39 = vmax.f32 %v679_v26, 0.0  ;;  %v665_v43 = vld [vmem:[#allocation2 + $0x60] sm:$0xff] }
 0x129   : > { %v696_v40 = vmax.f32 %v680_v28, 0.0  ;;  %v683_v41 = vadd.f32 %v926_v19, %v660_v30  ;;  %v698_v46 = vmax.f32 %v682_v34, 0.0  ;;  %v685_v51 = vadd.f32 %v926_v19, %v662_v36  ;;  %v668_v54 = vld [vmem:[#allocation2 + $0x28] sm:$0xff] }
 0x12a   : > { %v658_v27 = vld [vmem:[#allocation2 + $0x68] sm:$0xff]  ;;  %v966_v44 = vpack.c.bf16 %v693_v32, %v692_v31  ;;  %v666_v48 = vld [vmem:[#allocation2 + $0x70] sm:$0xff]  ;;  %v971_v49 = vpack.c.bf16 %v695_v39, %v694_v38  ;;  %v686_v52 = vadd.f32 %v926_v19, %v663_v37  ;;  %v700_v56 = vmax.f32 %v684_v47, 0.0 }
 0x12b   : > { %v681_v33 = vadd.f32 %v926_v19, %v658_v27  ;;  %v699_v50 = vmax.f32 %v683_v41, 0.0  ;;  %v688_v58 = vadd.f32 %v926_v19, %v665_v43  ;;  %v701_v60 = vmax.f32 %v685_v51, 0.0 }
 0x12c   : > { %967 = vst [vmem:[%s1327_s3] sm:$0xff] %v966_v44   ;;  %1003 = vst [vmem:[%s1327_s3 + $0x8] sm:$0xff] %v971_v49   ;;  %v702_v61 = vmax.f32 %v686_v52, 0.0  ;;  %v689_v62 = vadd.f32 %v926_v19, %v666_v48  ;;  %v703_v63 = vmax.f32 %v687_v57, 0.0  ;;  %v690_v1 = vadd.f32 %v926_v19, %v667_v53 }
 0x12d   : > { %v697_v45 = vmax.f32 %v681_v33, 0.0  ;;  %v981_v59 = vpack.c.bf16 %v699_v50, %v698_v46  ;;  %v704_v0 = vmax.f32 %v688_v58, 0.0  ;;  %v691_v2 = vadd.f32 %v926_v19, %v668_v54 }
 0x12e   : > { %v986_v3 = vpack.c.bf16 %v701_v60, %v700_v56  ;;  %v705_v4 = vmax.f32 %v689_v62, 0.0  ;;  %v991_v5 = vpack.c.bf16 %v703_v63, %v702_v61  ;;  %v706_v6 = vmax.f32 %v690_v1, 0.0 }
 0x12f   : > { %v976_v55 = vpack.c.bf16 %v697_v45, %v696_v40  ;;  %1005 = vst [vmem:[%s1327_s3 + $0x18] sm:$0xff] %v981_v59   ;;  %v707_v7 = vmax.f32 %v691_v2, 0.0 }
 0x130   : > { %1006 = vst [vmem:[%s1327_s3 + $0x20] sm:$0xff] %v986_v3   ;;  %v996_v8 = vpack.c.bf16 %v705_v4, %v704_v0  ;;  %1007 = vst [vmem:[%s1327_s3 + $0x28] sm:$0xff] %v991_v5  }
 0x131   : > { %1004 = vst [vmem:[%s1327_s3 + $0x10] sm:$0xff] %v976_v55   ;;  %v1001_v9 = vpack.c.bf16 %v707_v7, %v706_v6 }
 0x132   : > { %1008 = vst [vmem:[%s1327_s3 + $0x30] sm:$0xff] %v996_v8  }
 0x133   : > { %1009 = vst [vmem:[%s1327_s3 + $0x38] sm:$0xff] %v1001_v9  }
 0x134 PF: > { %s13_s16 = sadd.s32 1, %s1169_s16   ;;  %s1328_s12 = smov %s1157_s13 }
 0x135   : > { %p10_p12 = scmp.ge.s32.totalorder %s13_s16, 11   ;;  %s1329_s13 = smov %s1227_s20 }
 0x136   : > { %s1330_s14 = smov %s1165_s15  ;;  %s1331_s15 = smov %s1333_s17 }
 0x137   :  { %12 = sbr.rel (!%p10_p12) target bundleno = 3 (0x3), region = 122 }

// kernel: _lambda_.7
= control target key start
LH: loop header
LB: loop body
LE: loop exit
PB: predicated region body
PF: predicated region fallthrough
CT: control target
= control target key end

     0   :  { %s704_s0 = inlined_call_operand.vmem [shape: bf16[128,128], index: 0, kind: input, shape index: {}]   ;;  %s705_s1 = inlined_call_operand.vmem [shape: bf16[128,128], index: 1, kind: input, shape index: {}]   ;;  %s706_s2 = inlined_call_operand.vmem [shape: f32[1,128], index: 2, kind: input, shape index: {}]   ;;  %s707_s3 = inlined_call_operand.vmem [shape: f32[128,128], index: 3, kind: input, shape index: {}]   ;;  %s708_s4 = inlined_call_operand.hbm [shape: f32[128,128], index: 4, kind: output, shape index: {}]  }
   0x1   :  { %v518_v0 = vld [vmem:[%s705_s1 + $0x38] sm:$0xff]   ;;  %v519_v1 = vld [vmem:[%s705_s1 + $0x30] sm:$0xff]   ;;  %v520_v2 = vld [vmem:[%s705_s1 + $0x28] sm:$0xff]  }
   0x2   :  { %467 = vmatprep.subr.bf16.mxu0 %v518_v0  ;;  %499 = vmatprep.subr.bf16.mxu1 %v518_v0  ;;  %v521_v3 = vld [vmem:[%s705_s1 + $0x20] sm:$0xff]   ;;  %v522_v6 = vld [vmem:[%s705_s1 + $0x18] sm:$0xff]   ;;  %v523_v7 = vld [vmem:[%s705_s1 + $0x10] sm:$0xff]  }
   0x3   :  { %468 = vmatpush3.bf16.msra.mxu0 %v518_v0  ;;  %507 = vmatpush3.bf16.msra.mxu1 %v518_v0  ;;  %v526_v4 = vld [vmem:[%s704_s0] sm:$0xff]  }
   0x4   :  { %469 = vmatprep.subr.bf16.mxu0 %v519_v1  ;;  %500 = vmatprep.subr.bf16.mxu1 %v519_v1  ;;  %v527_v5 = vld [vmem:[%s704_s0 + $0x20] sm:$0xff]  }
   0x5   :  { %483 = vmatprep.mubr.bf16.mxu0 %v526_v4  ;;  %491 = vmatprep.mubr.bf16.mxu1 %v527_v5 }
   0x7   :  { %470 = vmatpush3.bf16.msra.mxu0 %v519_v1  ;;  %508 = vmatpush3.bf16.msra.mxu1 %v519_v1 }
   0x8   :  { %471 = vmatprep.subr.bf16.mxu0 %v520_v2  ;;  %501 = vmatprep.subr.bf16.mxu1 %v520_v2 }
   0xb   :  { %472 = vmatpush3.bf16.msra.mxu0 %v520_v2  ;;  %509 = vmatpush3.bf16.msra.mxu1 %v520_v2 }
   0xc   :  { %473 = vmatprep.subr.bf16.mxu0 %v521_v3  ;;  %502 = vmatprep.subr.bf16.mxu1 %v521_v3 }
   0xf   :  { %474 = vmatpush3.bf16.msra.mxu0 %v521_v3  ;;  %510 = vmatpush3.bf16.msra.mxu1 %v521_v3 }
  0x10   :  { %475 = vmatprep.subr.bf16.mxu0 %v522_v6  ;;  %503 = vmatprep.subr.bf16.mxu1 %v522_v6 }
  0x11   :  { %9 = vsyncpa [#allocation4], 0  ;;  %v524_v8 = vld [vmem:[%s705_s1 + $0x8] sm:$0xff]   ;;  %v525_v9 = vld [vmem:[%s705_s1] sm:$0xff]   ;;  %s556_s25 = smov [#allocation3]  }
  0x12   :  { %v528_v10 = vld [vmem:[%s704_s0 + $0x8] sm:$0xff]   ;;  %v530_v12 = vld [vmem:[%s704_s0 + $0x10] sm:$0xff]   ;;  %v532_v14 = vld [vmem:[%s704_s0 + $0x18] sm:$0xff]  }
  0x13   :  { %476 = vmatpush3.bf16.msra.mxu0 %v522_v6  ;;  %511 = vmatpush3.bf16.msra.mxu1 %v522_v6  ;;  %v529_v11 = vld [vmem:[%s704_s0 + $0x28] sm:$0xff]   ;;  %v531_v13 = vld [vmem:[%s704_s0 + $0x30] sm:$0xff]   ;;  %v533_v15 = vld [vmem:[%s704_s0 + $0x38] sm:$0xff]   ;;  %s423_s0 = sshll.u32 %s556_s25, 4  ;;  %s424_s0 = int_to_ptr.vmem [resolvable:$true] %s423_s0 }
  0x14   :  { %477 = vmatprep.subr.bf16.mxu0 %v523_v7  ;;  %504 = vmatprep.subr.bf16.mxu1 %v523_v7  ;;  %v635_v16 = vld [vmem:[%s706_s2] ss:$0 sm:$0xff]  ;;  %v356_v18 = vld [vmem:[%s707_s3 + $0x10] sm:$0xff]  ;;  %v357_v37 = vld [vmem:[%s707_s3 + $0x18] sm:$0xff]  ;;  %p539_p1 = scmp.lt.s32.totalorder %s424_s0, %s424_s0 }
  0x15   :  { %v364_v20 = vld [vmem:[%s707_s3 + $0x50] sm:$0xff]  ;;  %v354_v24 = vld [vmem:[%s707_s3] sm:$0xff]  ;;  %v365_v38 = vld [vmem:[%s707_s3 + $0x58] sm:$0xff] }
  0x16   :  { %v362_v26 = vld [vmem:[%s707_s3 + $0x40] sm:$0xff]  ;;  %v355_v42 = vld [vmem:[%s707_s3 + $0x8] sm:$0xff]  ;;  %v360_v52 = vld [vmem:[%s707_s3 + $0x30] sm:$0xff] }
  0x17   :  { %478 = vmatpush3.bf16.msra.mxu0 %v523_v7  ;;  %512 = vmatpush3.bf16.msra.mxu1 %v523_v7  ;;  %v363_v44 = vld [vmem:[%s707_s3 + $0x48] sm:$0xff]  ;;  %v368_v54 = vld [vmem:[%s707_s3 + $0x70] sm:$0xff]  ;;  %v358_v3 = vld [vmem:[%s707_s3 + $0x20] sm:$0xff] }
  0x18   :  { %479 = vmatprep.subr.bf16.mxu0 %v524_v8  ;;  %505 = vmatprep.subr.bf16.mxu1 %v524_v8  ;;  %v366_v4 = vld [vmem:[%s707_s3 + $0x60] sm:$0xff] }
  0x1b   :  { %480 = vmatpush3.bf16.msra.mxu0 %v524_v8  ;;  %513 = vmatpush3.bf16.msra.mxu1 %v524_v8  ;;  %v361_v8 = vld [vmem:[%s707_s3 + $0x38] sm:$0xff] }
  0x1c   :  { %481 = vmatprep.subr.bf16.mxu0 %v525_v9  ;;  %506 = vmatprep.subr.bf16.mxu1 %v525_v9 }
  0x1f   :  { %482 = vmatpush3.bf16.msra.mxu0 %v525_v9  ;;  %514 = vmatpush3.bf16.msra.mxu1 %v525_v9 }
  0x22   :  { %484 = vmatmul.mubr.bf16.vlgmr.msra.gmra.mxu0 %v528_v10  ;;  %492 = vmatmul.mubr.bf16.vlgmr.msra.gmra.mxu1 %v529_v11  ;;  %v369_v10 = vld [vmem:[%s707_s3 + $0x78] sm:$0xff] }
  0x23   :  { %487 = vmatprep.mubr.bf16.mxu0 %v530_v12  ;;  %495 = vmatprep.mubr.bf16.mxu1 %v531_v13 }
  0x2a   :  { %488 = vmatmul.mubr.bf16.gmra.mxu0 %v532_v14  ;;  %496 = vmatmul.mubr.bf16.gmra.mxu1 %v533_v15 }
  0xe2   :  { %v485_v17 = vpop.f32.mrf.mxu0  ;;  %v493_v19 = vpop.f32.mrf.mxu1 }
  0xe3   :  { %v340_v21 = vadd.f32 %v485_v17, %v635_v16  ;;  %v348_v22 = vadd.f32 %v493_v19, %v635_v16  ;;  %v359_v19 = vld [vmem:[%s707_s3 + $0x28] sm:$0xff] }
  0xe4   :  { %v217_v23 = vpop.f32.mrf.mxu0  ;;  %v249_v25 = vpop.f32.mrf.mxu1 }
  0xe5   :  { %v372_v27 = vadd.f32 %v356_v18, %v340_v21  ;;  %v380_v28 = vadd.f32 %v364_v20, %v348_v22  ;;  %v338_v29 = vadd.f32 %v635_v16, %v217_v23  ;;  %v346_v30 = vadd.f32 %v635_v16, %v249_v25  ;;  %v367_v21 = vld [vmem:[%s707_s3 + $0x68] sm:$0xff]  ;;  %s534_s3 = scalar_lea.vmem %s424_s0, 2048 }
  0xe6   :  { %v486_v31 = vpop.f32.mrf.mxu0  ;;  %v494_v32 = vpop.f32.mrf.mxu1  ;;  %p535_p0 = scmp.ne.s32.totalorder %s424_s0, %s534_s3  ;;  %p540_p2 = scmp.lt.s32.totalorder %s534_s3, %s534_s3 }
  0xe7   :  { %v388_v33 = vmax.f32 %v372_v27, 0.0  ;;  %v396_v34 = vmax.f32 %v380_v28, 0.0  ;;  %v370_v35 = vadd.f32 %v354_v24, %v338_v29  ;;  %v378_v36 = vadd.f32 %v362_v26, %v346_v30 }
  0xe8   :  { %v341_v39 = vadd.f32 %v486_v31, %v635_v16  ;;  %v349_v40 = vadd.f32 %v494_v32, %v635_v16  ;;  %v220_v41 = vpop.f32.mrf.mxu0  ;;  %v252_v43 = vpop.f32.mrf.mxu1  ;;  %p541_p3 = por %p540_p2, %p539_p1 }
  0xe9   :  { %404 = vst [vmem:[#allocation3 + $0x10] sm:$0xff] %v388_v33  ;;  %412 = vst [vmem:[#allocation3 + $0x50] sm:$0xff] %v396_v34  ;;  %v386_v45 = vmax.f32 %v370_v35, 0.0  ;;  %v394_v46 = vmax.f32 %v378_v36, 0.0  ;;  %v339_v47 = vadd.f32 %v635_v16, %v220_v41  ;;  %v347_v48 = vadd.f32 %v635_v16, %v252_v43 }
  0xea   :  { %v373_v49 = vadd.f32 %v357_v37, %v341_v39  ;;  %v381_v50 = vadd.f32 %v365_v38, %v349_v40  ;;  %v489_v51 = vpop.f32.mrf.mxu0  ;;  %v497_v53 = vpop.f32.mrf.mxu1  ;;  %p542_p4 = pnand %p541_p3, %p535_p0 }
  0xeb   :  { %402 = vst [vmem:[#allocation3] sm:$0xff] %v386_v45  ;;  %410 = vst [vmem:[#allocation3 + $0x40] sm:$0xff] %v394_v46  ;;  %v371_v55 = vadd.f32 %v355_v42, %v339_v47  ;;  %v379_v56 = vadd.f32 %v363_v44, %v347_v48  ;;  %v344_v57 = vadd.f32 %v489_v51, %v635_v16 }
  0xec   :  { %v352_v58 = vadd.f32 %v497_v53, %v635_v16  ;;  %v389_v59 = vmax.f32 %v373_v49, 0.0  ;;  %v397_v60 = vmax.f32 %v381_v50, 0.0  ;;  %v233_v61 = vpop.f32.mrf.mxu0  ;;  %v265_v62 = vpop.f32.mrf.mxu1 }
  0xed   :  { %v387_v63 = vmax.f32 %v371_v55, 0.0  ;;  %v395_v0 = vmax.f32 %v379_v56, 0.0  ;;  %v376_v1 = vadd.f32 %v360_v52, %v344_v57  ;;  %v342_v5 = vadd.f32 %v635_v16, %v233_v61 }
  0xee   :  { %v384_v2 = vadd.f32 %v368_v54, %v352_v58  ;;  %405 = vst [vmem:[#allocation3 + $0x18] sm:$0xff] %v389_v59  ;;  %413 = vst [vmem:[#allocation3 + $0x58] sm:$0xff] %v397_v60  ;;  %v350_v6 = vadd.f32 %v635_v16, %v265_v62  ;;  %v490_v7 = vpop.f32.mrf.mxu0  ;;  %v498_v9 = vpop.f32.mrf.mxu1 }
  0xef   :  { %403 = vst [vmem:[#allocation3 + $0x8] sm:$0xff] %v387_v63  ;;  %411 = vst [vmem:[#allocation3 + $0x48] sm:$0xff] %v395_v0  ;;  %v392_v11 = vmax.f32 %v376_v1, 0.0  ;;  %v345_v13 = vadd.f32 %v490_v7, %v635_v16  ;;  %v353_v14 = vadd.f32 %v498_v9, %v635_v16  ;;  %v374_v15 = vadd.f32 %v358_v3, %v342_v5 }
  0xf0   :  { %v400_v12 = vmax.f32 %v384_v2, 0.0  ;;  %v382_v17 = vadd.f32 %v366_v4, %v350_v6  ;;  %v236_v18 = vpop.f32.mrf.mxu0  ;;  %v268_v20 = vpop.f32.mrf.mxu1 }
  0xf1   :  { %408 = vst [vmem:[#allocation3 + $0x30] sm:$0xff] %v392_v11  ;;  %v377_v22 = vadd.f32 %v361_v8, %v345_v13  ;;  %v385_v23 = vadd.f32 %v369_v10, %v353_v14  ;;  %v343_v24 = vadd.f32 %v635_v16, %v236_v18  ;;  %v351_v25 = vadd.f32 %v635_v16, %v268_v20 }
  0xf2   :  { %416 = vst [vmem:[#allocation3 + $0x70] sm:$0xff] %v400_v12  ;;  %v390_v26 = vmax.f32 %v374_v15, 0.0  ;;  %v398_v27 = vmax.f32 %v382_v17, 0.0 }
  0xf3   :  { %v393_v28 = vmax.f32 %v377_v22, 0.0  ;;  %v401_v29 = vmax.f32 %v385_v23, 0.0  ;;  %v375_v30 = vadd.f32 %v359_v19, %v343_v24  ;;  %v383_v31 = vadd.f32 %v367_v21, %v351_v25 }
  0xf4   :  { %406 = vst [vmem:[#allocation3 + $0x20] sm:$0xff] %v390_v26  ;;  %414 = vst [vmem:[#allocation3 + $0x60] sm:$0xff] %v398_v27 }
  0xf5   :  { %409 = vst [vmem:[#allocation3 + $0x38] sm:$0xff] %v393_v28  ;;  %417 = vst [vmem:[#allocation3 + $0x78] sm:$0xff] %v401_v29  ;;  %v391_v32 = vmax.f32 %v375_v30, 0.0  ;;  %v399_v33 = vmax.f32 %v383_v31, 0.0 }
  0xf7   :  { %407 = vst [vmem:[#allocation3 + $0x28] sm:$0xff] %v391_v32  ;;  %415 = vst [vmem:[#allocation3 + $0x68] sm:$0xff] %v399_v33 }
  0xf8   :  { %545 = shalt.err (!%p542_p4)
}
  0xf9   :  { %s557_s26 = smov 128   ;;  %s558_s2 = smov 8  }
  0xfa   :  { %429 = dma.vmem_to_hbm [thread:$0]  %s424_s0, 2048, %s708_s4, [#allocation4], %s557_s26, %s557_s26, %s558_s2  }
  0xfb   :  { %554 = dma.done.wait [#allocation4], 2048  }
  0xfc   :  { %555 = vsyncadd [#allocation4], 4294965248 }
  0xfd   :  { %433 = vsyncpa [#allocation4], 1 }

</bundles_post_ra>
